<compile_context>
chip_gen: v5e
topology: v5e:2x2
jax: 0.10.0
libtpu: 0.0.40
codegen_flags: <defaults>
</compile_context>

<pallas_src>
import functools

import jax
import jax.numpy as jnp
from jax.experimental import pallas as pl
from jax.experimental.pallas import tpu as pltpu


# --------------------------------------------------------------------------------------
# kernel
# --------------------------------------------------------------------------------------
def ba_ffn_kernel(
    x_ref,                      # (Bt, N, C)  tokens-major input block (io dtype)
    ln1_g_ref, ln1_b_ref,       # (1, C) f32
    q_wt_ref, q_b_ref,          # (C, C) bf16 (per-head q pre-expanded over head_dim cols), (1, C) f32
    k_wt_ref, k_b_ref,          # (C, C) bf16 (head-major cols), (1, C) f32
    v_wt_ref, v_b_ref,          # (C, C) bf16, (1, C) f32
    proj_wt_ref, proj_b_ref,    # (C, C) bf16, (1, C) f32
    add1_w_ref,                 # (2,)  f32  SMEM
    ln2_g_ref, ln2_b_ref,       # (1, C) f32
    ffn1_wt_ref, ffn1_b_ref,    # (C, F) bf16, (1, F) f32
    ffn2_wt_ref, ffn2_b_ref,    # (F, C) bf16, (1, C) f32
    add2_w_ref,                 # (2,)  f32  SMEM
    o_ref,                      # (Bt, N, C)  tokens-major output block (io dtype)
    x1_scr,                     # (Bt, N, C)  f32 VMEM scratch: attention residual for the chunked FFN
    *, n_chunk, elu_in_bf16,
):
    eps_ln = 1e-5     # nn.LayerNorm default eps
    eps_add = 1e-12   # Add() epsilon

    bt, N, C = x_ref.shape
    M = bt * N

    # tokens-major block: no in-kernel layout transpose (handled once by XLA in the wrapper).
    x2 = x_ref[...].astype(jnp.float32).reshape(M, C)

    def layernorm(z, g_ref, b_ref):
        mu = jnp.mean(z, axis=-1, keepdims=True)
        d = z - mu
        var = jnp.mean(d * d, axis=-1, keepdims=True)
        return d * jax.lax.rsqrt(var + eps_ln) * g_ref[...] + b_ref[...]

    def mm(a_bf16, w_ref, b_ref):
        # bf16 operands on the MXU, f32 accumulation + f32 bias add.
        return jnp.dot(a_bf16, w_ref[...], preferred_element_type=jnp.float32) + b_ref[...]

    # -------------- BroadcastAttention: all heads at once, lane-dense at width C --------------
    xn = layernorm(x2, ln1_g_ref, ln1_b_ref)              # (M, C) f32
    xn_bf = xn.astype(jnp.bfloat16)                       # cast once, reused by q / k / v

    q = mm(xn_bf, q_wt_ref, q_b_ref)                      # (M, C): per-head score replicated per head_dim
    k = mm(xn_bf, k_wt_ref, k_b_ref)                      # (M, C) head-major columns
    v = mm(xn_bf, v_wt_ref, v_b_ref)                      # (M, C)

    # softmax over the sequence axis N (per batch element); lane axis = C (dense).
    q3 = q.reshape(bt, N, C)
    q_max = jnp.max(q3, axis=1, keepdims=True)
    e = jnp.exp(q3 - q_max)
    scores = e * pl.reciprocal(jnp.sum(e, axis=1, keepdims=True), approx=True)   # (Bt, N, C)

    ctx = jnp.sum(k.reshape(bt, N, C) * scores, axis=1, keepdims=True)           # (Bt, 1, C)
    attn = (jnp.maximum(v.reshape(bt, N, C), 0.0) * ctx).reshape(M, C)           # relu(v) * ctx
    attn = mm(attn.astype(jnp.bfloat16), proj_wt_ref, proj_b_ref)                # (M, C)

    # -------------- Add1 (weighted residual) --------------
    w0 = jnp.maximum(add1_w_ref[0], 0.0)
    w1 = jnp.maximum(add1_w_ref[1], 0.0)
    inv = 1.0 / (w0 + w1 + eps_add)                       # two scalars: scalar-unit divide
    x1 = (w0 * inv) * attn + (w1 * inv) * x2              # (M, C) f32

    # stash residual so the (optionally chunked) FFN re-reads slices through a ref
    x1_scr[...] = x1.reshape(bt, N, C)

    a0 = jnp.maximum(add2_w_ref[0], 0.0)
    a1 = jnp.maximum(add2_w_ref[1], 0.0)
    inv2 = 1.0 / (a0 + a1 + eps_add)
    a0 = a0 * inv2
    a1 = a1 * inv2

    # -------------- FFN + Add2, chunked over the sequence axis (caps VMEM on v7x) --------------
    n_steps = N // n_chunk

    @pl.loop(0, n_steps)
    def _(ci):
        n0 = pl.multiple_of(ci * n_chunk, n_chunk)
        x1c = x1_scr[:, pl.ds(n0, n_chunk), :].reshape(bt * n_chunk, C)
        x1n = layernorm(x1c, ln2_g_ref, ln2_b_ref)
        h = mm(x1n.astype(jnp.bfloat16), ffn1_wt_ref, ffn1_b_ref)                # (rows, F) f32
        if elu_in_bf16:
            # bf16 exp halves EUP occupancy on v6e/v7x; pass elu_in_bf16=False on v5e.
            hb = h.astype(jnp.bfloat16)
            act = jnp.where(hb > 0, hb, jnp.exp(jnp.minimum(hb, 0.0)) - 1.0)
        else:
            act = jnp.where(h > 0, h, jnp.exp(jnp.minimum(h, 0.0)) - 1.0).astype(jnp.bfloat16)
        y = mm(act, ffn2_wt_ref, ffn2_b_ref)                                     # (rows, C) f32
        out = a0 * y + a1 * x1c
        o_ref[:, pl.ds(n0, n_chunk), :] = out.reshape(bt, n_chunk, C).astype(o_ref.dtype)


# --------------------------------------------------------------------------------------
# tiling helpers
# --------------------------------------------------------------------------------------
def _pick_b_tile(B, N, C, row_target=256, act_budget_bytes=24 << 20):
    """Batch elements per grid step: ~256 matmul rows (fills the 256-wide MXU on v6e/v7x),
    capped so the f32 activation set stays well inside VMEM (matters on v7x's 64 MiB)."""
    bt = max(1, min(B, max(1, row_target // max(N, 1))))
    while B % bt:
        bt -= 1
    while bt > 1 and 12 * 4 * bt * N * C > act_budget_bytes:
        bt = max(1, bt // 2)
        while B % bt:
            bt -= 1
    # Leave >=2 grid steps so both v7x TensorCores get work, unless that would drop the
    # matmul LHS below ~128 rows.
    if B // bt < 2 and B >= 2 and (bt // 2) * N >= 128:
        bt2 = bt // 2
        while B % bt2:
            bt2 -= 1
        bt = max(1, bt2)
    return bt


def _pick_ffn_chunk(b_tile, N, C, F_, budget_bytes=8 << 20):
    """Sequence chunk for the FFN: N itself (single chunk) if everything fits, otherwise the
    largest multiple-of-8 divisor of N whose (rows, F) f32 intermediates fit the budget."""
    per_row = 4 * (F_ + 2 * C) + 2 * F_
    if b_tile * N * per_row <= budget_bytes:
        return N
    cands = [d for d in range(8, N, 8) if N % d == 0]
    fitting = [d for d in cands if b_tile * d * per_row <= budget_bytes]
    if fitting:
        return max(fitting)
    return min(cands) if cands else N


# --------------------------------------------------------------------------------------
# one-time weight prep (hoisted out of the per-call path)
# --------------------------------------------------------------------------------------
def prepare_ba_ffn_params(params, num_heads):
    """Split the fused QKV conv into head-major [q|k|v] column groups, fold the per-head ->
    head_dim expand (0/1) matrix into the q weight/bias, transpose 1x1-conv weights for
    (tokens, C) @ (C, out) matmuls, and cast matmul weights to bf16 once."""
    C = params["proj_w"].shape[0]
    H = num_heads
    head_dim = C // H
    span = 1 + 2 * head_dim
    wdt = jnp.bfloat16
    row = lambda a: a.reshape(1, -1).astype(jnp.float32)

    qkv_w = params["qkv_w"].reshape(H, span, C).astype(jnp.float32)
    qkv_b = params["qkv_b"].reshape(H, span).astype(jnp.float32)

    # expand[h, c] = 1 iff output column c belongs to head h (exact 0/1 placement).
    head_of_col = jnp.arange(C, dtype=jnp.int32) // head_dim
    expand = (jnp.arange(H, dtype=jnp.int32)[:, None] == head_of_col[None, :]).astype(jnp.float32)

    q_wt = (jnp.transpose(qkv_w[:, 0, :]) @ expand).astype(wdt)                        # (C, C)
    q_b = (qkv_b[:, 0] @ expand).reshape(1, C).astype(jnp.float32)                     # (1, C)
    k_wt = jnp.transpose(qkv_w[:, 1:1 + head_dim, :].reshape(H * head_dim, C)).astype(wdt)
    k_b = qkv_b[:, 1:1 + head_dim].reshape(1, H * head_dim).astype(jnp.float32)
    v_wt = jnp.transpose(qkv_w[:, 1 + head_dim:, :].reshape(H * head_dim, C)).astype(wdt)
    v_b = qkv_b[:, 1 + head_dim:].reshape(1, H * head_dim).astype(jnp.float32)

    return {
        "ln1_g": row(params["ln1_g"]), "ln1_b": row(params["ln1_b"]),
        "q_wt": q_wt, "q_b": q_b,
        "k_wt": k_wt, "k_b": k_b,
        "v_wt": v_wt, "v_b": v_b,
        "proj_wt": params["proj_w"].T.astype(wdt), "proj_b": row(params["proj_b"]),
        "add1_w": params["add1_w"].astype(jnp.float32),
        "ln2_g": row(params["ln2_g"]), "ln2_b": row(params["ln2_b"]),
        "ffn1_wt": params["ffn1_w"].T.astype(wdt), "ffn1_b": row(params["ffn1_b"]),
        "ffn2_wt": params["ffn2_w"].T.astype(wdt), "ffn2_b": row(params["ffn2_b"]),
        "add2_w": params["add2_w"].astype(jnp.float32),
    }


# --------------------------------------------------------------------------------------
# kernel launch (tokens-major) + PyTorch-layout wrapper
# --------------------------------------------------------------------------------------
def ba_ffn_block_bnc(x_bnc, prep, *, b_tile=None, ffn_n_chunk=None, elu_in_bf16=True):
    """Core launch on tokens-major (B, N, C) input; returns (B, N, C)."""
    B, N, C = x_bnc.shape
    F_ = prep["ffn1_wt"].shape[1]

    if b_tile is None:
        b_tile = _pick_b_tile(B, N, C)
    assert B % b_tile == 0, (B, b_tile)
    if ffn_n_chunk is None:
        ffn_n_chunk = _pick_ffn_chunk(b_tile, N, C, F_)
    assert N % ffn_n_chunk == 0 and (ffn_n_chunk == N or ffn_n_chunk % 8 == 0), (N, ffn_n_chunk)

    grid = (B // b_tile,)
    io_bytes = x_bnc.dtype.itemsize
    M = b_tile * N
    rows_c = b_tile * ffn_n_chunk
    single_buf_weights = hasattr(pl, "Buffered")
    w_bufs = 1 if single_buf_weights else 2

    # ---- scoped-VMEM budget: in/out blocks, residual scratch, weights, intermediates ----
    need = (
        2 * 2 * M * C * io_bytes                           # input + output blocks, double-buffered
        + 4 * M * C                                        # x1 residual scratch (f32)
        + w_bufs * 2 * (4 * C * C + 2 * C * F_)            # bf16 matmul weights
        + w_bufs * 4 * (7 * C + F_)                        # f32 biases / LN params
        + 4 * M * 9 * C + 2 * M * 2 * C                    # attention f32 + bf16 intermediates
        + 4 * rows_c * (2 * C + F_) + 2 * rows_c * F_      # FFN chunk intermediates
    )
    try:
        vmem_cap = pltpu.get_tpu_info().vmem_capacity_bytes
    except Exception:
        vmem_cap = 64 * 1024 * 1024                        # conservative (v7x per-TensorCore)
    vmem_limit = int(min(max(int(1.5 * need), 32 * 1024 * 1024), int(0.9 * vmem_cap)))

    def const_spec(shape):
        # Weights / biases: index_map never changes -> one VMEM buffer is enough.
        # Static capability check; guard only spec construction, never kernel execution.
        idx = lambda *_: (0,) * len(shape)
        if single_buf_weights:
            try:
                return pl.BlockSpec(shape, idx, pipeline_mode=pl.Buffered(1))
            except TypeError:
                pass
        return pl.BlockSpec(shape, idx)

    smem = pl.BlockSpec(memory_space=pltpu.MemorySpace.SMEM)
    io_spec = pl.BlockSpec((b_tile, N, C), lambda b: (b, 0, 0))

    kernel = functools.partial(ba_ffn_kernel, n_chunk=ffn_n_chunk, elu_in_bf16=elu_in_bf16)

    return pl.pallas_call(
        kernel,
        out_shape=jax.ShapeDtypeStruct((B, N, C), x_bnc.dtype),
        grid=grid,
        in_specs=[
            io_spec,
            const_spec((1, C)), const_spec((1, C)),
            const_spec((C, C)), const_spec((1, C)),
            const_spec((C, C)), const_spec((1, C)),
            const_spec((C, C)), const_spec((1, C)),
            const_spec((C, C)), const_spec((1, C)),
            smem,
            const_spec((1, C)), const_spec((1, C)),
            const_spec((C, F_)), const_spec((1, F_)),
            const_spec((F_, C)), const_spec((1, C)),
            smem,
        ],
        out_specs=io_spec,
        scratch_shapes=[pltpu.VMEM((b_tile, N, C), jnp.float32)],
        compiler_params=pltpu.CompilerParams(
            dimension_semantics=("parallel",),
            vmem_limit_bytes=vmem_limit,
        ),
    )(
        x_bnc,
        prep["ln1_g"], prep["ln1_b"],
        prep["q_wt"], prep["q_b"],
        prep["k_wt"], prep["k_b"],
        prep["v_wt"], prep["v_b"],
        prep["proj_wt"], prep["proj_b"],
        prep["add1_w"],
        prep["ln2_g"], prep["ln2_b"],
        prep["ffn1_wt"], prep["ffn1_b"],
        prep["ffn2_wt"], prep["ffn2_b"],
        prep["add2_w"],
    )


def ba_ffn_block(x_bcn, params=None, num_heads=None, *, prepared=None, b_tile=None,
                 ffn_n_chunk=None, elu_in_bf16=True, io_dtype=None):
    """PyTorch-layout entry point: x (B, C, N) -> (B, C, N).
    The (B, C, N) <-> (B, N, C) layout changes are done once by XLA in the wrapper (full
    HBM bandwidth) instead of per-block XLU transposes inside the kernel.  Pass
    io_dtype=jnp.bfloat16 to halve activation HBM traffic (useful on v5e)."""
    prep = prepared if prepared is not None else prepare_ba_ffn_params(params, num_heads)
    x_bnc = jnp.transpose(x_bcn, (0, 2, 1))
    if io_dtype is not None:
        x_bnc = x_bnc.astype(io_dtype)
    out_bnc = ba_ffn_block_bnc(x_bnc, prep, b_tile=b_tile, ffn_n_chunk=ffn_n_chunk,
                               elu_in_bf16=elu_in_bf16)
    return jnp.transpose(out_bnc, (0, 2, 1)).astype(x_bcn.dtype)


# --------------------------------------------------------------------------------------
# pure-JAX reference (mirrors the PyTorch forward, eval mode / no dropout)
# --------------------------------------------------------------------------------------
def ba_ffn_reference(x_bcn, params, num_heads):
    B, C, N = x_bcn.shape
    hd = C // num_heads
    eps_ln, eps_add = 1e-5, 1e-12

    def layernorm(z_bcn, g, b):  # LayerNorm over channel dim
        z = jnp.transpose(z_bcn, (0, 2, 1))
        mu = jnp.mean(z, -1, keepdims=True)
        var = jnp.mean((z - mu) ** 2, -1, keepdims=True)
        z = (z - mu) / jnp.sqrt(var + eps_ln) * g + b
        return jnp.transpose(z, (0, 2, 1))

    def conv1d(z_bcn, w, b):  # 1x1 conv
        return jnp.einsum("oc,bcn->bon", w, z_bcn) + b[None, :, None]

    def add(pair, w):
        w = jnp.maximum(w, 0.0)
        w = w / (jnp.sum(w) + eps_add)
        return w[0] * pair[0] + w[1] * pair[1]

    xn = layernorm(x_bcn, params["ln1_g"], params["ln1_b"])
    qkv = conv1d(xn, params["qkv_w"], params["qkv_b"]).reshape(B, num_heads, 1 + 2 * hd, N)
    q, k, v = qkv[:, :, :1], qkv[:, :, 1:1 + hd], qkv[:, :, 1 + hd:]
    scores = jax.nn.softmax(q, axis=-1)
    ctx = jnp.sum(k * scores, axis=-1, keepdims=True)
    out = jax.nn.relu(v) * ctx                                   # (B,H,hd,N)
    out = jnp.transpose(out, (0, 1, 3, 2)).reshape(B, num_heads, N, hd)
    out = jnp.concatenate([out[:, i] for i in range(num_heads)], axis=-1)  # (B,N,C)
    out = jnp.transpose(out, (0, 2, 1))                          # (B,C,N)
    attn = conv1d(out, params["proj_w"], params["proj_b"])

    x1 = add([attn, x_bcn], params["add1_w"])

    x1n = layernorm(x1, params["ln2_g"], params["ln2_b"])
    h = conv1d(x1n, params["ffn1_w"], params["ffn1_b"])
    h = jnp.where(h > 0, h, jnp.exp(jnp.minimum(h, 0.0)) - 1.0)
    y = conv1d(h, params["ffn2_w"], params["ffn2_b"])
    return add([y, x1], params["add2_w"])


# --------------------------------------------------------------------------------------
if __name__ == "__main__":
    B, C, N = 2, 32, 16          # batch, dim (channels), sequence length
    ffn_dim = 64
    num_heads = 2
    hd = C // num_heads
    Hq = num_heads * (1 + 2 * hd)

    key = jax.random.PRNGKey(0)
    ks = jax.random.split(key, 10)

    params = {
        "ln1_g": jnp.ones((C,), jnp.float32),
        "ln1_b": jnp.zeros((C,), jnp.float32),
        "qkv_w": 0.05 * jax.random.normal(ks[0], (Hq, C), jnp.float32),
        "qkv_b": 0.05 * jax.random.normal(ks[1], (Hq,), jnp.float32),
        "proj_w": 0.05 * jax.random.normal(ks[2], (C, C), jnp.float32),
        "proj_b": 0.05 * jax.random.normal(ks[3], (C,), jnp.float32),
        "add1_w": jnp.ones((2,), jnp.float32),
        "ln2_g": jnp.ones((C,), jnp.float32),
        "ln2_b": jnp.zeros((C,), jnp.float32),
        "ffn1_w": 0.05 * jax.random.normal(ks[4], (ffn_dim, C), jnp.float32),
        "ffn1_b": 0.05 * jax.random.normal(ks[5], (ffn_dim,), jnp.float32),
        "ffn2_w": 0.05 * jax.random.normal(ks[6], (C, ffn_dim), jnp.float32),
        "ffn2_b": 0.05 * jax.random.normal(ks[7], (C,), jnp.float32),
        "add2_w": jnp.ones((2,), jnp.float32),
    }

    x = jax.random.normal(ks[8], (B, C, N), jnp.float32)   # PyTorch Conv1d layout (B, C, N)

    # one-time weight prep, reused across calls (review: hoist out of the hot path)
    prep = prepare_ba_ffn_params(params, num_heads)

    ref = jax.block_until_ready(ba_ffn_reference(x, params, num_heads))

    # default path (single FFN chunk at this size)
    run = jax.jit(lambda xx: ba_ffn_block(xx, prepared=prep))
    out = jax.block_until_ready(run(x))
    assert out.shape == (B, C, N)
    err = float(jnp.max(jnp.abs(out - ref)))
    # matmuls / ELU run in bf16 (f32 accumulation) -> compare at 1e-2
    assert jnp.allclose(out, ref, rtol=1e-2, atol=1e-2), err

    # exercise the v7x-oriented chunked-FFN path (multiple sequence chunks)
    run_chunked = jax.jit(lambda xx: ba_ffn_block(xx, prepared=prep, ffn_n_chunk=8))
    out_c = jax.block_until_ready(run_chunked(x))
    err_c = float(jnp.max(jnp.abs(out_c - ref)))
    assert jnp.allclose(out_c, ref, rtol=1e-2, atol=1e-2), err_c

    print("KERNEL_OK")
</pallas_src>

<mosaic_0001>
module attributes {stable_mosaic.version = 11 : i64} {
  func.func @ba_ffn_kernel(%arg0: i32, %arg1: memref<2x16x32xf32, #tpu.memory_space<vmem>>, %arg2: memref<1x32xf32, #tpu.memory_space<vmem>>, %arg3: memref<1x32xf32, #tpu.memory_space<vmem>>, %arg4: memref<32x32xbf16, #tpu.memory_space<vmem>>, %arg5: memref<1x32xf32, #tpu.memory_space<vmem>>, %arg6: memref<32x32xbf16, #tpu.memory_space<vmem>>, %arg7: memref<1x32xf32, #tpu.memory_space<vmem>>, %arg8: memref<32x32xbf16, #tpu.memory_space<vmem>>, %arg9: memref<1x32xf32, #tpu.memory_space<vmem>>, %arg10: memref<32x32xbf16, #tpu.memory_space<vmem>>, %arg11: memref<1x32xf32, #tpu.memory_space<vmem>>, %arg12: memref<2xf32, #tpu.memory_space<smem>>, %arg13: memref<1x32xf32, #tpu.memory_space<vmem>>, %arg14: memref<1x32xf32, #tpu.memory_space<vmem>>, %arg15: memref<32x64xbf16, #tpu.memory_space<vmem>>, %arg16: memref<1x64xf32, #tpu.memory_space<vmem>>, %arg17: memref<64x32xbf16, #tpu.memory_space<vmem>>, %arg18: memref<1x32xf32, #tpu.memory_space<vmem>>, %arg19: memref<2xf32, #tpu.memory_space<smem>>, %arg20: memref<2x16x32xf32, #tpu.memory_space<vmem>>, %arg21: memref<2x16x32xf32, #tpu.memory_space<vmem>>) attributes {dimension_semantics = [#tpu.dimension_semantics<parallel>], iteration_bounds = array<i64: 1>, scalar_prefetch = 0 : i64, scratch_operands = 1 : i64, tpu.core_type = #tpu.core_type<tc>, window_params = [{transform_indices = @transform_0, window_bounds = array<i64: 2, 16, 32>}, {pipeline_mode = #tpu.pipeline_mode<synchronous>, transform_indices = @transform_1, window_bounds = array<i64: 1, 32>}, {pipeline_mode = #tpu.pipeline_mode<synchronous>, transform_indices = @transform_2, window_bounds = array<i64: 1, 32>}, {pipeline_mode = #tpu.pipeline_mode<synchronous>, transform_indices = @transform_3, window_bounds = array<i64: 32, 32>}, {pipeline_mode = #tpu.pipeline_mode<synchronous>, transform_indices = @transform_4, window_bounds = array<i64: 1, 32>}, {pipeline_mode = #tpu.pipeline_mode<synchronous>, transform_indices = @transform_5, window_bounds = array<i64: 32, 32>}, {pipeline_mode = #tpu.pipeline_mode<synchronous>, transform_indices = @transform_6, window_bounds = array<i64: 1, 32>}, {pipeline_mode = #tpu.pipeline_mode<synchronous>, transform_indices = @transform_7, window_bounds = array<i64: 32, 32>}, {pipeline_mode = #tpu.pipeline_mode<synchronous>, transform_indices = @transform_8, window_bounds = array<i64: 1, 32>}, {pipeline_mode = #tpu.pipeline_mode<synchronous>, transform_indices = @transform_9, window_bounds = array<i64: 32, 32>}, {pipeline_mode = #tpu.pipeline_mode<synchronous>, transform_indices = @transform_10, window_bounds = array<i64: 1, 32>}, {transform_indices = @transform_11, window_bounds = array<i64: 2>}, {pipeline_mode = #tpu.pipeline_mode<synchronous>, transform_indices = @transform_12, window_bounds = array<i64: 1, 32>}, {pipeline_mode = #tpu.pipeline_mode<synchronous>, transform_indices = @transform_13, window_bounds = array<i64: 1, 32>}, {pipeline_mode = #tpu.pipeline_mode<synchronous>, transform_indices = @transform_14, window_bounds = array<i64: 32, 64>}, {pipeline_mode = #tpu.pipeline_mode<synchronous>, transform_indices = @transform_15, window_bounds = array<i64: 1, 64>}, {pipeline_mode = #tpu.pipeline_mode<synchronous>, transform_indices = @transform_16, window_bounds = array<i64: 64, 32>}, {pipeline_mode = #tpu.pipeline_mode<synchronous>, transform_indices = @transform_17, window_bounds = array<i64: 1, 32>}, {transform_indices = @transform_18, window_bounds = array<i64: 2>}, {transform_indices = @transform_19, window_bounds = array<i64: 2, 16, 32>}]} {
    %c0 = arith.constant 0 : index
    %c0_0 = arith.constant 0 : index
    %c0_1 = arith.constant 0 : index
    %0 = vector.load %arg1[%c0, %c0_0, %c0_1] : memref<2x16x32xf32, #tpu.memory_space<vmem>>, vector<2x16x32xf32>
    %1 = vector.shape_cast %0 : vector<2x16x32xf32> to vector<32x32xf32>
    %cst = arith.constant dense<0.000000e+00> : vector<32xf32>
    %2 = vector.multi_reduction <add>, %1, %cst [1] : vector<32x32xf32> to vector<32xf32>
    %3 = vector.shape_cast %2 : vector<32xf32> to vector<32x1xf32>
    %cst_2 = arith.constant 3.200000e+01 : f32
    %4 = vector.broadcast %cst_2 : f32 to vector<32x1xf32>
    %5 = arith.divf %3, %4 : vector<32x1xf32>
    %6 = vector.broadcast %5 : vector<32x1xf32> to vector<32x32xf32>
    %7 = arith.subf %1, %6 : vector<32x32xf32>
    %8 = arith.mulf %7, %7 : vector<32x32xf32>
    %cst_3 = arith.constant dense<0.000000e+00> : vector<32xf32>
    %9 = vector.multi_reduction <add>, %8, %cst_3 [1] : vector<32x32xf32> to vector<32xf32>
    %10 = vector.shape_cast %9 : vector<32xf32> to vector<32x1xf32>
    %cst_4 = arith.constant 3.200000e+01 : f32
    %11 = vector.broadcast %cst_4 : f32 to vector<32x1xf32>
    %12 = arith.divf %10, %11 : vector<32x1xf32>
    %cst_5 = arith.constant 9.99999974E-6 : f32
    %13 = vector.broadcast %cst_5 : f32 to vector<32x1xf32>
    %14 = arith.addf %12, %13 : vector<32x1xf32>
    %15 = math.rsqrt %14 : vector<32x1xf32>
    %16 = vector.broadcast %15 : vector<32x1xf32> to vector<32x32xf32>
    %17 = arith.mulf %7, %16 : vector<32x32xf32>
    %c0_6 = arith.constant 0 : index
    %c0_7 = arith.constant 0 : index
    %18 = vector.load %arg2[%c0_6, %c0_7] : memref<1x32xf32, #tpu.memory_space<vmem>>, vector<1x32xf32>
    %19 = vector.broadcast %18 : vector<1x32xf32> to vector<32x32xf32>
    %20 = arith.mulf %17, %19 : vector<32x32xf32>
    %c0_8 = arith.constant 0 : index
    %c0_9 = arith.constant 0 : index
    %21 = vector.load %arg3[%c0_8, %c0_9] : memref<1x32xf32, #tpu.memory_space<vmem>>, vector<1x32xf32>
    %22 = vector.broadcast %21 : vector<1x32xf32> to vector<32x32xf32>
    %23 = arith.addf %20, %22 : vector<32x32xf32>
    %24 = arith.truncf %23 : vector<32x32xf32> to vector<32x32xbf16>
    %c0_10 = arith.constant 0 : index
    %c0_11 = arith.constant 0 : index
    %25 = vector.load %arg4[%c0_10, %c0_11] : memref<32x32xbf16, #tpu.memory_space<vmem>>, vector<32x32xbf16>
    %cst_12 = arith.constant dense<0.000000e+00> : vector<32x32xf32>
    %26 = tpu.matmul %24, %25, %cst_12 {dimension_numbers = #tpu.dot_dimension_numbers<[1], [0], [0], [1], [0, 0, 1, 1], [], []>} : vector<32x32xbf16>, vector<32x32xbf16>, vector<32x32xf32> -> vector<32x32xf32>
    %c0_13 = arith.constant 0 : index
    %c0_14 = arith.constant 0 : index
    %27 = vector.load %arg5[%c0_13, %c0_14] : memref<1x32xf32, #tpu.memory_space<vmem>>, vector<1x32xf32>
    %28 = vector.broadcast %27 : vector<1x32xf32> to vector<32x32xf32>
    %29 = arith.addf %26, %28 : vector<32x32xf32>
    %c0_15 = arith.constant 0 : index
    %c0_16 = arith.constant 0 : index
    %30 = vector.load %arg6[%c0_15, %c0_16] : memref<32x32xbf16, #tpu.memory_space<vmem>>, vector<32x32xbf16>
    %cst_17 = arith.constant dense<0.000000e+00> : vector<32x32xf32>
    %31 = tpu.matmul %24, %30, %cst_17 {dimension_numbers = #tpu.dot_dimension_numbers<[1], [0], [0], [1], [0, 0, 1, 1], [], []>} : vector<32x32xbf16>, vector<32x32xbf16>, vector<32x32xf32> -> vector<32x32xf32>
    %c0_18 = arith.constant 0 : index
    %c0_19 = arith.constant 0 : index
    %32 = vector.load %arg7[%c0_18, %c0_19] : memref<1x32xf32, #tpu.memory_space<vmem>>, vector<1x32xf32>
    %33 = vector.broadcast %32 : vector<1x32xf32> to vector<32x32xf32>
    %34 = arith.addf %31, %33 : vector<32x32xf32>
    %c0_20 = arith.constant 0 : index
    %c0_21 = arith.constant 0 : index
    %35 = vector.load %arg8[%c0_20, %c0_21] : memref<32x32xbf16, #tpu.memory_space<vmem>>, vector<32x32xbf16>
    %cst_22 = arith.constant dense<0.000000e+00> : vector<32x32xf32>
    %36 = tpu.matmul %24, %35, %cst_22 {dimension_numbers = #tpu.dot_dimension_numbers<[1], [0], [0], [1], [0, 0, 1, 1], [], []>} : vector<32x32xbf16>, vector<32x32xbf16>, vector<32x32xf32> -> vector<32x32xf32>
    %c0_23 = arith.constant 0 : index
    %c0_24 = arith.constant 0 : index
    %37 = vector.load %arg9[%c0_23, %c0_24] : memref<1x32xf32, #tpu.memory_space<vmem>>, vector<1x32xf32>
    %38 = vector.broadcast %37 : vector<1x32xf32> to vector<32x32xf32>
    %39 = arith.addf %36, %38 : vector<32x32xf32>
    %40 = vector.shape_cast %29 : vector<32x32xf32> to vector<2x16x32xf32>
    %cst_25 = arith.constant dense<0xFF800000> : vector<2x32xf32>
    %41 = vector.multi_reduction <maximumf>, %40, %cst_25 [1] : vector<2x16x32xf32> to vector<2x32xf32>
    %42 = vector.shape_cast %41 : vector<2x32xf32> to vector<2x1x32xf32>
    %43 = vector.broadcast %42 : vector<2x1x32xf32> to vector<2x16x32xf32>
    %44 = arith.subf %40, %43 : vector<2x16x32xf32>
    %45 = math.exp %44 : vector<2x16x32xf32>
    %cst_26 = arith.constant dense<0.000000e+00> : vector<2x32xf32>
    %46 = vector.multi_reduction <add>, %45, %cst_26 [1] : vector<2x16x32xf32> to vector<2x32xf32>
    %47 = vector.shape_cast %46 : vector<2x32xf32> to vector<2x1x32xf32>
    %48 = tpu.reciprocal %47 {approx = true} : vector<2x1x32xf32> -> vector<2x1x32xf32>
    %49 = vector.broadcast %48 : vector<2x1x32xf32> to vector<2x16x32xf32>
    %50 = arith.mulf %45, %49 : vector<2x16x32xf32>
    %51 = vector.shape_cast %34 : vector<32x32xf32> to vector<2x16x32xf32>
    %52 = arith.mulf %51, %50 : vector<2x16x32xf32>
    %cst_27 = arith.constant dense<0.000000e+00> : vector<2x32xf32>
    %53 = vector.multi_reduction <add>, %52, %cst_27 [1] : vector<2x16x32xf32> to vector<2x32xf32>
    %54 = vector.shape_cast %53 : vector<2x32xf32> to vector<2x1x32xf32>
    %55 = vector.shape_cast %39 : vector<32x32xf32> to vector<2x16x32xf32>
    %cst_28 = arith.constant 0.000000e+00 : f32
    %56 = vector.broadcast %cst_28 : f32 to vector<2x16x32xf32>
    %57 = arith.maximumf %55, %56 : vector<2x16x32xf32>
    %58 = vector.broadcast %54 : vector<2x1x32xf32> to vector<2x16x32xf32>
    %59 = arith.mulf %57, %58 : vector<2x16x32xf32>
    %60 = vector.shape_cast %59 : vector<2x16x32xf32> to vector<32x32xf32>
    %61 = arith.truncf %60 : vector<32x32xf32> to vector<32x32xbf16>
    %c0_29 = arith.constant 0 : index
    %c0_30 = arith.constant 0 : index
    %62 = vector.load %arg10[%c0_29, %c0_30] : memref<32x32xbf16, #tpu.memory_space<vmem>>, vector<32x32xbf16>
    %cst_31 = arith.constant dense<0.000000e+00> : vector<32x32xf32>
    %63 = tpu.matmul %61, %62, %cst_31 {dimension_numbers = #tpu.dot_dimension_numbers<[1], [0], [0], [1], [0, 0, 1, 1], [], []>} : vector<32x32xbf16>, vector<32x32xbf16>, vector<32x32xf32> -> vector<32x32xf32>
    %c0_32 = arith.constant 0 : index
    %c0_33 = arith.constant 0 : index
    %64 = vector.load %arg11[%c0_32, %c0_33] : memref<1x32xf32, #tpu.memory_space<vmem>>, vector<1x32xf32>
    %65 = vector.broadcast %64 : vector<1x32xf32> to vector<32x32xf32>
    %66 = arith.addf %63, %65 : vector<32x32xf32>
    %c0_34 = arith.constant 0 : index
    %67 = memref.load %arg12[%c0_34] : memref<2xf32, #tpu.memory_space<smem>>
    %cst_35 = arith.constant 0.000000e+00 : f32
    %68 = arith.maximumf %67, %cst_35 : f32
    %c1 = arith.constant 1 : index
    %69 = memref.load %arg12[%c1] : memref<2xf32, #tpu.memory_space<smem>>
    %cst_36 = arith.constant 0.000000e+00 : f32
    %70 = arith.maximumf %69, %cst_36 : f32
    %71 = arith.addf %68, %70 : f32
    %cst_37 = arith.constant 9.99999996E-13 : f32
    %72 = arith.addf %71, %cst_37 : f32
    %cst_38 = arith.constant 1.000000e+00 : f32
    %73 = arith.divf %cst_38, %72 : f32
    %74 = arith.mulf %68, %73 : f32
    %75 = vector.broadcast %74 : f32 to vector<32x32xf32>
    %76 = arith.mulf %75, %66 : vector<32x32xf32>
    %77 = arith.mulf %70, %73 : f32
    %78 = vector.broadcast %77 : f32 to vector<32x32xf32>
    %79 = arith.mulf %78, %1 : vector<32x32xf32>
    %80 = arith.addf %76, %79 : vector<32x32xf32>
    %81 = vector.shape_cast %80 : vector<32x32xf32> to vector<2x16x32xf32>
    %c0_39 = arith.constant 0 : index
    %c0_40 = arith.constant 0 : index
    %c0_41 = arith.constant 0 : index
    %82 = vector.load %arg21[%c0_39, %c0_40, %c0_41] : memref<2x16x32xf32, #tpu.memory_space<vmem>>, vector<2x16x32xf32>
    tpu.vector_store %arg21[%c0_39, %c0_40, %c0_41], %81 {strides = array<i32>} : memref<2x16x32xf32, #tpu.memory_space<vmem>>, vector<2x16x32xf32>,
    %c0_42 = arith.constant 0 : index
    %83 = memref.load %arg19[%c0_42] : memref<2xf32, #tpu.memory_space<smem>>
    %cst_43 = arith.constant 0.000000e+00 : f32
    %84 = arith.maximumf %83, %cst_43 : f32
    %c1_44 = arith.constant 1 : index
    %85 = memref.load %arg19[%c1_44] : memref<2xf32, #tpu.memory_space<smem>>
    %cst_45 = arith.constant 0.000000e+00 : f32
    %86 = arith.maximumf %85, %cst_45 : f32
    %87 = arith.addf %84, %86 : f32
    %cst_46 = arith.constant 9.99999996E-13 : f32
    %88 = arith.addf %87, %cst_46 : f32
    %cst_47 = arith.constant 1.000000e+00 : f32
    %89 = arith.divf %cst_47, %88 : f32
    %90 = arith.mulf %84, %89 : f32
    %91 = arith.mulf %86, %89 : f32
    %c0_i32 = arith.constant 0 : i32
    %c1_i32 = arith.constant 1 : i32
    %92 = arith.muli %c0_i32, %c1_i32 : i32
    %c0_i32_48 = arith.constant 0 : i32
    %93 = arith.addi %c0_i32_48, %92 : i32
    %c16_i32 = arith.constant 16 : i32
    %94 = arith.muli %93, %c16_i32 : i32
    %95 = tpu.assume_multiple %94, 16 : i32
    %c0_49 = arith.constant 0 : index
    %96 = arith.index_cast %95 : i32 to index
    %c0_50 = arith.constant 0 : index
    %97 = vector.load %arg21[%c0_49, %96, %c0_50] : memref<2x16x32xf32, #tpu.memory_space<vmem>>, vector<2x16x32xf32>
    %98 = vector.shape_cast %97 : vector<2x16x32xf32> to vector<32x32xf32>
    %cst_51 = arith.constant dense<0.000000e+00> : vector<32xf32>
    %99 = vector.multi_reduction <add>, %98, %cst_51 [1] : vector<32x32xf32> to vector<32xf32>
    %100 = vector.shape_cast %99 : vector<32xf32> to vector<32x1xf32>
    %cst_52 = arith.constant 3.200000e+01 : f32
    %101 = vector.broadcast %cst_52 : f32 to vector<32x1xf32>
    %102 = arith.divf %100, %101 : vector<32x1xf32>
    %103 = vector.broadcast %102 : vector<32x1xf32> to vector<32x32xf32>
    %104 = arith.subf %98, %103 : vector<32x32xf32>
    %105 = arith.mulf %104, %104 : vector<32x32xf32>
    %cst_53 = arith.constant dense<0.000000e+00> : vector<32xf32>
    %106 = vector.multi_reduction <add>, %105, %cst_53 [1] : vector<32x32xf32> to vector<32xf32>
    %107 = vector.shape_cast %106 : vector<32xf32> to vector<32x1xf32>
    %cst_54 = arith.constant 3.200000e+01 : f32
    %108 = vector.broadcast %cst_54 : f32 to vector<32x1xf32>
    %109 = arith.divf %107, %108 : vector<32x1xf32>
    %cst_55 = arith.constant 9.99999974E-6 : f32
    %110 = vector.broadcast %cst_55 : f32 to vector<32x1xf32>
    %111 = arith.addf %109, %110 : vector<32x1xf32>
    %112 = math.rsqrt %111 : vector<32x1xf32>
    %113 = vector.broadcast %112 : vector<32x1xf32> to vector<32x32xf32>
    %114 = arith.mulf %104, %113 : vector<32x32xf32>
    %c0_56 = arith.constant 0 : index
    %c0_57 = arith.constant 0 : index
    %115 = vector.load %arg13[%c0_56, %c0_57] : memref<1x32xf32, #tpu.memory_space<vmem>>, vector<1x32xf32>
    %116 = vector.broadcast %115 : vector<1x32xf32> to vector<32x32xf32>
    %117 = arith.mulf %114, %116 : vector<32x32xf32>
    %c0_58 = arith.constant 0 : index
    %c0_59 = arith.constant 0 : index
    %118 = vector.load %arg14[%c0_58, %c0_59] : memref<1x32xf32, #tpu.memory_space<vmem>>, vector<1x32xf32>
    %119 = vector.broadcast %118 : vector<1x32xf32> to vector<32x32xf32>
    %120 = arith.addf %117, %119 : vector<32x32xf32>
    %121 = arith.truncf %120 : vector<32x32xf32> to vector<32x32xbf16>
    %c0_60 = arith.constant 0 : index
    %c0_61 = arith.constant 0 : index
    %122 = vector.load %arg15[%c0_60, %c0_61] : memref<32x64xbf16, #tpu.memory_space<vmem>>, vector<32x64xbf16>
    %cst_62 = arith.constant dense<0.000000e+00> : vector<32x64xf32>
    %123 = tpu.matmul %121, %122, %cst_62 {dimension_numbers = #tpu.dot_dimension_numbers<[1], [0], [0], [1], [0, 0, 1, 1], [], []>} : vector<32x32xbf16>, vector<32x64xbf16>, vector<32x64xf32> -> vector<32x64xf32>
    %c0_63 = arith.constant 0 : index
    %c0_64 = arith.constant 0 : index
    %124 = vector.load %arg16[%c0_63, %c0_64] : memref<1x64xf32, #tpu.memory_space<vmem>>, vector<1x64xf32>
    %125 = vector.broadcast %124 : vector<1x64xf32> to vector<32x64xf32>
    %126 = arith.addf %123, %125 : vector<32x64xf32>
    %127 = arith.truncf %126 : vector<32x64xf32> to vector<32x64xbf16>
    %cst_65 = arith.constant 0.000000e+00 : bf16
    %128 = vector.broadcast %cst_65 : bf16 to vector<32x64xbf16>
    %129 = arith.cmpf ogt, %127, %128 : vector<32x64xbf16>
    %cst_66 = arith.constant 0.000000e+00 : bf16
    %130 = vector.broadcast %cst_66 : bf16 to vector<32x64xbf16>
    %131 = arith.minimumf %127, %130 : vector<32x64xbf16>
    %132 = math.exp %131 : vector<32x64xbf16>
    %cst_67 = arith.constant 1.000000e+00 : bf16
    %133 = vector.broadcast %cst_67 : bf16 to vector<32x64xbf16>
    %134 = arith.subf %132, %133 : vector<32x64xbf16>
    %135 = arith.select %129, %127, %134 : vector<32x64xi1>, vector<32x64xbf16>
    %c0_68 = arith.constant 0 : index
    %c0_69 = arith.constant 0 : index
    %136 = vector.load %arg17[%c0_68, %c0_69] : memref<64x32xbf16, #tpu.memory_space<vmem>>, vector<64x32xbf16>
    %cst_70 = arith.constant dense<0.000000e+00> : vector<32x32xf32>
    %137 = tpu.matmul %135, %136, %cst_70 {dimension_numbers = #tpu.dot_dimension_numbers<[1], [0], [0], [1], [0, 0, 1, 1], [], []>} : vector<32x64xbf16>, vector<64x32xbf16>, vector<32x32xf32> -> vector<32x32xf32>
    %c0_71 = arith.constant 0 : index
    %c0_72 = arith.constant 0 : index
    %138 = vector.load %arg18[%c0_71, %c0_72] : memref<1x32xf32, #tpu.memory_space<vmem>>, vector<1x32xf32>
    %139 = vector.broadcast %138 : vector<1x32xf32> to vector<32x32xf32>
    %140 = arith.addf %137, %139 : vector<32x32xf32>
    %141 = vector.broadcast %90 : f32 to vector<32x32xf32>
    %142 = arith.mulf %141, %140 : vector<32x32xf32>
    %143 = vector.broadcast %91 : f32 to vector<32x32xf32>
    %144 = arith.mulf %143, %98 : vector<32x32xf32>
    %145 = arith.addf %142, %144 : vector<32x32xf32>
    %146 = vector.shape_cast %145 : vector<32x32xf32> to vector<2x16x32xf32>
    %c0_73 = arith.constant 0 : index
    %147 = arith.index_cast %95 : i32 to index
    %c0_74 = arith.constant 0 : index
    %148 = vector.load %arg20[%c0_73, %147, %c0_74] : memref<2x16x32xf32, #tpu.memory_space<vmem>>, vector<2x16x32xf32>
    tpu.vector_store %arg20[%c0_73, %147, %c0_74], %146 {strides = array<i32>} : memref<2x16x32xf32, #tpu.memory_space<vmem>>, vector<2x16x32xf32>,
    %c1_i32_75 = arith.constant 1 : i32
    return
  }
  func.func @transform_0(%arg0: i32) -> (i32, i32, i32) {
    %c0_i32 = arith.constant 0 : i32
    %c0_i32_0 = arith.constant 0 : i32
    %c0_i32_1 = arith.constant 0 : i32
    return %arg0, %c0_i32, %c0_i32_0 : i32, i32, i32
  }
  func.func @transform_1(%arg0: i32) -> (i32, i32) {
    %c0_i32 = arith.constant 0 : i32
    %c0_i32_0 = arith.constant 0 : i32
    %c0_i32_1 = arith.constant 0 : i32
    return %c0_i32, %c0_i32_0 : i32, i32
  }
  func.func @transform_2(%arg0: i32) -> (i32, i32) {
    %c0_i32 = arith.constant 0 : i32
    %c0_i32_0 = arith.constant 0 : i32
    %c0_i32_1 = arith.constant 0 : i32
    return %c0_i32, %c0_i32_0 : i32, i32
  }
  func.func @transform_3(%arg0: i32) -> (i32, i32) {
    %c0_i32 = arith.constant 0 : i32
    %c0_i32_0 = arith.constant 0 : i32
    %c0_i32_1 = arith.constant 0 : i32
    return %c0_i32, %c0_i32_0 : i32, i32
  }
  func.func @transform_4(%arg0: i32) -> (i32, i32) {
    %c0_i32 = arith.constant 0 : i32
    %c0_i32_0 = arith.constant 0 : i32
    %c0_i32_1 = arith.constant 0 : i32
    return %c0_i32, %c0_i32_0 : i32, i32
  }
  func.func @transform_5(%arg0: i32) -> (i32, i32) {
    %c0_i32 = arith.constant 0 : i32
    %c0_i32_0 = arith.constant 0 : i32
    %c0_i32_1 = arith.constant 0 : i32
    return %c0_i32, %c0_i32_0 : i32, i32
  }
  func.func @transform_6(%arg0: i32) -> (i32, i32) {
    %c0_i32 = arith.constant 0 : i32
    %c0_i32_0 = arith.constant 0 : i32
    %c0_i32_1 = arith.constant 0 : i32
    return %c0_i32, %c0_i32_0 : i32, i32
  }
  func.func @transform_7(%arg0: i32) -> (i32, i32) {
    %c0_i32 = arith.constant 0 : i32
    %c0_i32_0 = arith.constant 0 : i32
    %c0_i32_1 = arith.constant 0 : i32
    return %c0_i32, %c0_i32_0 : i32, i32
  }
  func.func @transform_8(%arg0: i32) -> (i32, i32) {
    %c0_i32 = arith.constant 0 : i32
    %c0_i32_0 = arith.constant 0 : i32
    %c0_i32_1 = arith.constant 0 : i32
    return %c0_i32, %c0_i32_0 : i32, i32
  }
  func.func @transform_9(%arg0: i32) -> (i32, i32) {
    %c0_i32 = arith.constant 0 : i32
    %c0_i32_0 = arith.constant 0 : i32
    %c0_i32_1 = arith.constant 0 : i32
    return %c0_i32, %c0_i32_0 : i32, i32
  }
  func.func @transform_10(%arg0: i32) -> (i32, i32) {
    %c0_i32 = arith.constant 0 : i32
    %c0_i32_0 = arith.constant 0 : i32
    %c0_i32_1 = arith.constant 0 : i32
    return %c0_i32, %c0_i32_0 : i32, i32
  }
  func.func @transform_11(%arg0: i32) -> i32 {
    %c0_i32 = arith.constant 0 : i32
    %c0_i32_0 = arith.constant 0 : i32
    return %c0_i32 : i32
  }
  func.func @transform_12(%arg0: i32) -> (i32, i32) {
    %c0_i32 = arith.constant 0 : i32
    %c0_i32_0 = arith.constant 0 : i32
    %c0_i32_1 = arith.constant 0 : i32
    return %c0_i32, %c0_i32_0 : i32, i32
  }
  func.func @transform_13(%arg0: i32) -> (i32, i32) {
    %c0_i32 = arith.constant 0 : i32
    %c0_i32_0 = arith.constant 0 : i32
    %c0_i32_1 = arith.constant 0 : i32
    return %c0_i32, %c0_i32_0 : i32, i32
  }
  func.func @transform_14(%arg0: i32) -> (i32, i32) {
    %c0_i32 = arith.constant 0 : i32
    %c0_i32_0 = arith.constant 0 : i32
    %c0_i32_1 = arith.constant 0 : i32
    return %c0_i32, %c0_i32_0 : i32, i32
  }
  func.func @transform_15(%arg0: i32) -> (i32, i32) {
    %c0_i32 = arith.constant 0 : i32
    %c0_i32_0 = arith.constant 0 : i32
    %c0_i32_1 = arith.constant 0 : i32
    return %c0_i32, %c0_i32_0 : i32, i32
  }
  func.func @transform_16(%arg0: i32) -> (i32, i32) {
    %c0_i32 = arith.constant 0 : i32
    %c0_i32_0 = arith.constant 0 : i32
    %c0_i32_1 = arith.constant 0 : i32
    return %c0_i32, %c0_i32_0 : i32, i32
  }
  func.func @transform_17(%arg0: i32) -> (i32, i32) {
    %c0_i32 = arith.constant 0 : i32
    %c0_i32_0 = arith.constant 0 : i32
    %c0_i32_1 = arith.constant 0 : i32
    return %c0_i32, %c0_i32_0 : i32, i32
  }
  func.func @transform_18(%arg0: i32) -> i32 {
    %c0_i32 = arith.constant 0 : i32
    %c0_i32_0 = arith.constant 0 : i32
    return %c0_i32 : i32
  }
  func.func @transform_19(%arg0: i32) -> (i32, i32, i32) {
    %c0_i32 = arith.constant 0 : i32
    %c0_i32_0 = arith.constant 0 : i32
    %c0_i32_1 = arith.constant 0 : i32
    return %arg0, %c0_i32, %c0_i32_0 : i32, i32, i32
  }
}

</mosaic_0001>

<bundles_post_ra>
// kernel: _lambda_.1
= control target key start
LH: loop header
LB: loop body
LE: loop exit
PB: predicated region body
PF: predicated region fallthrough
CT: control target
= control target key end

     0   :  { %s1833_s0 = inlined_call_operand.hbm [shape: f32[2,16,32], index: 0, kind: input, shape index: {}]   ;;  %s1834_s1 = inlined_call_operand.vmem [shape: f32[1,32], index: 1, kind: input, shape index: {}, may-alias: {1,12}]   ;;  %s1835_s2 = inlined_call_operand.vmem [shape: f32[1,32], index: 2, kind: input, shape index: {}, may-alias: {2,13}]   ;;  %s1836_s3 = inlined_call_operand.hbm [shape: bf16[32,32], index: 3, kind: input, shape index: {}]   ;;  %s1837_s4 = inlined_call_operand.hbm [shape: f32[1,32], index: 4, kind: input, shape index: {}]   ;;  %s1838_s5 = inlined_call_operand.hbm [shape: bf16[32,32], index: 5, kind: input, shape index: {}]   ;;  %s1839_s6 = inlined_call_operand.hbm [shape: f32[1,32], index: 6, kind: input, shape index: {}]   ;;  %s1840_s7 = inlined_call_operand.hbm [shape: bf16[32,32], index: 7, kind: input, shape index: {}]   ;;  %s1841_s8 = inlined_call_operand.hbm [shape: f32[1,32], index: 8, kind: input, shape index: {}]   ;;  %s1842_s9 = inlined_call_operand.hbm [shape: bf16[32,32], index: 9, kind: input, shape index: {}]   ;;  %s1843_s10 = inlined_call_operand.hbm [shape: f32[1,32], index: 10, kind: input, shape index: {}]   ;;  %s1844_s11 = inlined_call_operand.vmem [shape: f32[2], index: 11, kind: input, shape index: {}, may-alias: {11,18}]   ;;  %s1845_s12 = inlined_call_operand.vmem [shape: f32[1,32], index: 12, kind: input, shape index: {}, may-alias: {1,12}]   ;;  %s1846_s13 = inlined_call_operand.vmem [shape: f32[1,32], index: 13, kind: input, shape index: {}, may-alias: {2,13}]   ;;  %s1847_s14 = inlined_call_operand.vmem [shape: bf16[32,64], index: 14, kind: input, shape index: {}]   ;;  %s1848_s15 = inlined_call_operand.vmem [shape: f32[1,64], index: 15, kind: input, shape index: {}]   ;;  %s1849_s16 = inlined_call_operand.hbm [shape: bf16[64,32], index: 16, kind: input, shape index: {}]   ;;  %s1850_s17 = inlined_call_operand.vmem [shape: f32[1,32], index: 17, kind: input, shape index: {}]   ;;  %s1851_s18 = inlined_call_operand.vmem [shape: f32[2], index: 18, kind: input, shape index: {}, may-alias: {11,18}]   ;;  %s1852_s19 = inlined_call_operand.hbm [shape: f32[2,16,32], index: 19, kind: output, shape index: {}]  }
   0x1   :  { %1853 = sst [smem:[#allocation34_spill]] %s1833_s0 }
   0x2   :  { %1854 = sst [smem:[#allocation35_spill]] %s1834_s1 }
   0x3   :  { %1855 = sst [smem:[#allocation36_spill]] %s1835_s2 }
   0x4   :  { %1856 = sst [smem:[#allocation37_spill]] %s1836_s3 }
   0x5   :  { %24 = vsyncpa [#allocation4], 0 }
   0x6   :  { %25 = vsyncpa [#allocation8], 0 }
   0x7   :  { %26 = vsyncpa [#allocation11], 0 }
   0x8   :  { %27 = vsyncpa [#allocation14], 0 }
   0x9   :  { %28 = vsyncpa [#allocation17], 0 }
   0xa   :  { %29 = vsyncpa [#allocation6], 0 }
   0xb   :  { %30 = vsyncpa [#allocation21], 0 }
   0xc   :  { %31 = vsyncpa [#allocation23], 0  ;;  %s1857_s20 = sld [smem:[#allocation37_spill]] }
  0x12   :  { %s54_s21 = sshll.u32 %s1857_s20, 4  ;;  %s55_s21 = int_to_ptr.hbm [resolvable:$true] %s54_s21 }
  0x13   :  { %32 = vsyncpa [#allocation5], 0  ;;  %s1475_s1 = smov [#allocation7]   ;;  %s78_s24 = sshll.u32 %s1838_s5, 4  ;;  %s79_s24 = int_to_ptr.hbm [resolvable:$true] %s78_s24 }
  0x14   :  { %s56_s22 = sshll.u32 %s1475_s1, 4  ;;  %s1476_s25 = smov 64   ;;  %s57_s22 = int_to_ptr.vmem [resolvable:$true] %s56_s22 }
  0x15   :  { %s1477_s3 = smov 4   ;;  %s1478_s26 = smov [#allocation10]  }
  0x16   :  { %62 = dma.hbm_to_vmem [thread:$0]  %s55_s21, 256, %s57_s22, [#allocation8], %s1476_s25, %s1476_s25, %s1477_s3  }
  0x17   :  { %s80_s27 = sshll.u32 %s1478_s26, 4  ;;  %s102_s0 = sshll.u32 %s1840_s7, 4  ;;  %s81_s27 = int_to_ptr.vmem [resolvable:$true] %s80_s27  ;;  %s103_s0 = int_to_ptr.hbm [resolvable:$true] %s102_s0 }
  0x18   :  { %86 = dma.hbm_to_vmem [thread:$0]  %s79_s24, 256, %s81_s27, [#allocation11], %s1476_s25, %s1476_s25, %s1477_s3  }
  0x19   :  { %s126_s20 = sshll.u32 %s1842_s9, 4  ;;  %s1479_s1 = smov [#allocation13]   ;;  %s127_s20 = int_to_ptr.hbm [resolvable:$true] %s126_s20 }
  0x1a   :  { %s104_s2 = sshll.u32 %s1479_s1, 4  ;;  %s1480_s21 = smov [#allocation16]   ;;  %s105_s2 = int_to_ptr.vmem [resolvable:$true] %s104_s2 }
  0x1b   :  { %110 = dma.hbm_to_vmem [thread:$0]  %s103_s0, 256, %s105_s2, [#allocation14], %s1476_s25, %s1476_s25, %s1477_s3  }
  0x1c   :  { %s128_s7 = sshll.u32 %s1480_s21, 4  ;;  %s1858_s26 = sld [smem:[#allocation34_spill]]  ;;  %s129_s7 = int_to_ptr.vmem [resolvable:$true] %s128_s7 }
  0x1d   :  { %134 = dma.hbm_to_vmem [thread:$0]  %s127_s20, 256, %s129_s7, [#allocation17], %s1476_s25, %s1476_s25, %s1477_s3  }
  0x1e   :  { %s1481_s9 = smov [#allocation3]   ;;  %s68_s5 = sshll.u32 %s1837_s4, 4  ;;  %s69_s5 = int_to_ptr.hbm [resolvable:$true] %s68_s5 }
  0x1f   :  { %s39_s24 = sshll.u32 %s1481_s9, 4  ;;  %s1482_s0 = smov 128   ;;  %s40_s24 = int_to_ptr.vmem [resolvable:$true] %s39_s24 }
  0x20   :  { %s1483_s30 = smov 8   ;;  %s1484_s1 = smov [#allocation9]  }
  0x21   :  { %s70_s2 = sshll.u32 %s1484_s1, 4  ;;  %s92_s20 = sshll.u32 %s1839_s6, 4  ;;  %s71_s2 = int_to_ptr.vmem [resolvable:$true] %s70_s2  ;;  %s93_s20 = int_to_ptr.hbm [resolvable:$true] %s92_s20 }
  0x22   :  { %s37_s28 = sshll.u32 %s1858_s26, 4  ;;  %s116_s4 = sshll.u32 %s1841_s8, 4  ;;  %s38_s28 = int_to_ptr.hbm [resolvable:$true] %s37_s28  ;;  %s117_s4 = int_to_ptr.hbm [resolvable:$true] %s116_s4 }
  0x23   :  { %45 = dma.hbm_to_vmem [thread:$0]  %s38_s28, 512, %s40_s24, [#allocation4], %s1482_s0, %s1482_s0, %s1483_s30  }
  0x24   :  { %73 = dma.hbm_to_vmem [thread:$0]  %s69_s5, 16, %s71_s2, [#allocation8]  }
  0x25   :  { %s1485_s26 = smov [#allocation12]   ;;  %s1486_s28 = smov [#allocation15]  }
  0x26   :  { %s94_s9 = sshll.u32 %s1485_s26, 4  ;;  %s118_s24 = sshll.u32 %s1486_s28, 4  ;;  %s95_s9 = int_to_ptr.vmem [resolvable:$true] %s94_s9  ;;  %s119_s24 = int_to_ptr.vmem [resolvable:$true] %s118_s24 }
  0x27   :  { %97 = dma.hbm_to_vmem [thread:$0]  %s93_s20, 16, %s95_s9, [#allocation11]  }
  0x28   :  { %s140_s1 = sshll.u32 %s1843_s10, 4  ;;  %s151_s2 = sshll.u32 %s1844_s11, 4  ;;  %s141_s1 = int_to_ptr.hbm [resolvable:$true] %s140_s1  ;;  %s152_s2 = int_to_ptr.vmem [resolvable:$true] %s151_s2 }
  0x29   :  { %121 = dma.hbm_to_vmem [thread:$0]  %s117_s4, 16, %s119_s24, [#allocation14]  }
  0x2a   :  { %s1487_s21 = smov [#allocation18]   ;;  %s1488_s22 = smov [#allocation19]  }
  0x2b   :  { %s142_s8 = sshll.u32 %s1487_s21, 4  ;;  %s167_s23 = sshll.u32 %s1849_s16, 4  ;;  %s143_s8 = int_to_ptr.vmem [resolvable:$true] %s142_s8  ;;  %s168_s23 = int_to_ptr.hbm [resolvable:$true] %s167_s23 }
  0x2c   :  { %145 = dma.hbm_to_vmem [thread:$0]  %s141_s1, 16, %s143_s8, [#allocation17]  }
  0x2d   :  { %154 = dma.vmem_to_smem %s152_s2, 16, %s1488_s22, [#allocation6]  }
  0x2e   :  { %s1489_s10 = smov [#allocation20]   ;;  %s183_s28 = sshll.u32 %s1851_s18, 4  ;;  %s184_s28 = int_to_ptr.vmem [resolvable:$true] %s183_s28 }
  0x2f   :  { %s169_s26 = sshll.u32 %s1489_s10, 4  ;;  %s1490_s11 = smov [#allocation22]   ;;  %s170_s26 = int_to_ptr.vmem [resolvable:$true] %s169_s26 }
  0x30   :  { %175 = dma.hbm_to_vmem [thread:$0]  %s168_s23, 512, %s170_s26, [#allocation21], %s1476_s25, %s1476_s25, %s1477_s3  }
  0x31   :  { %186 = dma.vmem_to_smem %s184_s28, 16, %s1490_s11, [#allocation23]  }
  0x32   :  { %1457 = dma.done.wait [#allocation4], 512  }
  0x33   :  { %1458 = vsyncadd [#allocation4], 4294966784 }
  0x34   :  { %1459 = dma.done.wait [#allocation8], 272  }
  0x35   :  { %1460 = vsyncadd [#allocation8], 4294967024 }
  0x36   :  { %1461 = dma.done.wait [#allocation11], 272  }
  0x37   :  { %1462 = vsyncadd [#allocation11], 4294967024 }
  0x38   :  { %1463 = dma.done.wait [#allocation14], 272  }
  0x39   :  { %1464 = vsyncadd [#allocation14], 4294967024 }
  0x3a   :  { %1465 = dma.done.wait [#allocation17], 272  }
  0x3b   :  { %1466 = vsyncadd [#allocation17], 4294967024 }
  0x3c   :  { %1467 = dma.done.wait [#allocation6], 16  }
  0x3d   :  { %1468 = vsyncadd [#allocation6], 4294967280 }
  0x3e   :  { %1469 = dma.done.wait [#allocation21], 512  }
  0x3f   :  { %1470 = vsyncadd [#allocation21], 4294966784 }
  0x40   :  { %1471 = dma.done.wait [#allocation23], 16  }
  0x41   :  { %1472 = vsyncadd [#allocation23], 4294967280 }
  0x42   :  { %235 = sfence }
  0x43   :  { %v1648_v0 = vld [vmem:[#allocation3 + $0x10] sm:$0xff]  ;;  %vm241_vm0 = vcmask 261120   ;;  %v1650_v1 = vld [vmem:[#allocation3] sm:$0xff]  ;;  %v1656_v4 = vld [vmem:[#allocation3 + $0x18] sm:$0xff]  ;;  %v1491_v8 = vmov 32.0   ;;  %s1859_s25 = sld [smem:[#allocation35_spill]] }
  0x44   :  { %v248_v2 = vsel %vm241_vm0, %v1648_v0, 0.0  ;;  %v242_v3 = vsel %vm241_vm0, %v1650_v1, 0.0  ;;  %v1658_v5 = vld [vmem:[#allocation3 + $0x8] sm:$0xff]  ;;  %v251_v6 = vsel %vm241_vm0, %v1656_v4, 0.0  ;;  %1127 = vrcp.f32 %v1491_v8  ;;  %v1079_v36 = vld [vmem:[#allocation10 + $0x8] sm:$0xff]  ;;  %v1078_v42 = vld [vmem:[#allocation10] sm:$0xff] }
  0x45   :  { %249 = vadd.xlane.f32.xlu1 %v248_v2  ;;  %243 = vadd.xlane.f32.xlu0 %v242_v3  ;;  %v245_v7 = vsel %vm241_vm0, %v1658_v5, 0.0  ;;  %v1077_v35 = vld [vmem:[#allocation7 + $0x8] sm:$0xff]  ;;  %v1076_v41 = vld [vmem:[#allocation7] sm:$0xff]  ;;  %s1860_s27 = sld [smem:[#allocation36_spill]]  ;;  %s1492_s2 = smov 0.0  }
  0x46   :  { %387 = vmatpush.bf16.msra.mxu0 %v1077_v35  ;;  %1090 = vmatpush.bf16.msra.mxu2 %v1077_v35  ;;  %v1081_v47 = vld [vmem:[#allocation13 + $0x8] sm:$0xff]  ;;  %v1080_v50 = vld [vmem:[#allocation13] sm:$0xff]  ;;  %s609_s29 = sld [smem:[#allocation19]] }
  0x47   :  { %426 = vmatpush.bf16.msra.mxu1 %v1079_v36  ;;  %1092 = vmatpush.bf16.msra.mxu3 %v1079_v36  ;;  %s1042_s1 = sld [smem:[#allocation19 + $0x1]] }
  0x48   :  { %s651_s6 = sld [smem:[#allocation22]] }
  0x49   :  { %s1043_s5 = sld [smem:[#allocation22 + $0x1]] }
  0x4a   :  { %v1128_v9 = vpop.eup %1127  ;;  %388 = vmatpush.bf16.msra.mxu0 %v1076_v41  ;;  %1091 = vmatpush.bf16.msra.mxu2 %v1076_v41 }
  0x4b   :  { %v255_v10 = vmul.f32 32.0, %v1128_v9  ;;  %vm259_vm1 = vweird.f32 %v1128_v9  ;;  %427 = vmatpush.bf16.msra.mxu1 %v1078_v42  ;;  %1093 = vmatpush.bf16.msra.mxu3 %v1078_v42 }
  0x4c   :  { %s1722_s21 = smax.f32 %s1492_s2, %s609_s29 }
  0x4d   :  { %252 = vadd.xlane.f32.xlu1 %v251_v6  ;;  %246 = vadd.xlane.f32.xlu0 %v245_v7  ;;  %v256_v11 = vsub.f32 1.0, %v255_v10  ;;  %s1724_s8 = smax.f32 %s1492_s2, %s1042_s1 }
  0x4e   :  { %465 = vmatpush.bf16.msrb.mxu2 %v1081_v47  ;;  %s1726_s22 = smax.f32 %s1492_s2, %s651_s6  ;;  %s613_s7 = sadd.f32 %s1724_s8, %s1722_s21 }
  0x4f   :  { %v257_v12 = vmul.f32 %v1128_v9, %v256_v11  ;;  %s1728_s20 = smax.f32 %s1492_s2, %s1043_s5 }
  0x50   :  { %s655_s23 = sadd.f32 %s1728_s20, %s1726_s22 }
  0x51   :  { %v258_v13 = vadd.f32 %v1128_v9, %v257_v12  ;;  %s614_s10 = sadd.f32 1e-12, %s613_s7 }
  0x52   :  { %466 = vmatpush.bf16.msrb.mxu2 %v1080_v50  ;;  %s656_s26 = sadd.f32 1e-12, %s655_s23 }
  0x53   :  { %v1664_v14 = vsel %vm259_vm1, %v1128_v9, %v258_v13 }
  0xb8   :  { %v250_v15 = vpop.xlane.xlu1 %249  ;;  %v244_v16 = vpop.xlane.xlu0 %243 }
  0xb9   :  { %v263_v17 = vmul.f32 %v1664_v14, %v250_v15  ;;  %v261_v18 = vmul.f32 %v1664_v14, %v244_v16 }
  0xbb   :  { %v1669_v19 = vsub.f32 %v1648_v0, %v263_v17  ;;  %v1672_v20 = vsub.f32 %v1650_v1, %v261_v18 }
  0xbd   :  { %v271_v21 = vmul.f32 %v1669_v19, %v1669_v19  ;;  %v269_v22 = vmul.f32 %v1672_v20, %v1672_v20 }
  0xbf   :  { %v279_v23 = vsel %vm241_vm0, %v271_v21, 0.0  ;;  %v273_v24 = vsel %vm241_vm0, %v269_v22, 0.0  ;;  %v1117_v21 = vld [vmem:[%s1859_s25] ss:$0 sm:$0xff] }
  0xc0   :  { %v253_v25 = vpop.xlane.xlu1 %252  ;;  %280 = vadd.xlane.f32.xlu0 %v279_v23  ;;  %274 = vadd.xlane.f32.xlu2 %v273_v24  ;;  %v247_v26 = vpop.xlane.xlu0 %246 }
  0xc1   :  { %v264_v27 = vmul.f32 %v1664_v14, %v253_v25  ;;  %v262_v28 = vmul.f32 %v1664_v14, %v247_v26 }
  0xc3   :  { %v1683_v29 = vsub.f32 %v1656_v4, %v264_v27  ;;  %v1686_v30 = vsub.f32 %v1658_v5, %v262_v28 }
  0xc5   :  { %v272_v31 = vmul.f32 %v1683_v29, %v1683_v29  ;;  %v270_v32 = vmul.f32 %v1686_v30, %v1686_v30 }
  0xc7   :  { %v282_v33 = vsel %vm241_vm0, %v272_v31, 0.0  ;;  %v276_v34 = vsel %vm241_vm0, %v270_v32, 0.0 }
  0xc8   :  { %283 = vadd.xlane.f32.xlu1 %v282_v33  ;;  %277 = vadd.xlane.f32.xlu2 %v276_v34 }
 0x133   :  { %v275_v37 = vpop.xlane.xlu2 %274  ;;  %v281_v38 = vpop.xlane.xlu0 %280 }
 0x134   :  { %v285_v39 = vmul.f32 %v275_v37, %v1664_v14  ;;  %v287_v40 = vmul.f32 %v281_v38, %v1664_v14 }
 0x136   :  { %v289_v43 = vadd.f32 1e-05, %v285_v39  ;;  %v291_v44 = vadd.f32 1e-05, %v287_v40 }
 0x138   :  { %1129 = vrsqrt.f32 %v289_v43  ;;  %vm319_vm2 = vweird.f32 %v291_v44  ;;  %vm299_vm5 = vweird.f32 %v289_v43 }
 0x139   :  { %1131 = vrsqrt.f32 %v291_v44 }
 0x13b   :  { %v284_v45 = vpop.xlane.xlu1 %283  ;;  %v278_v46 = vpop.xlane.xlu2 %277 }
 0x13c   :  { %v288_v48 = vmul.f32 %v284_v45, %v1664_v14  ;;  %v286_v49 = vmul.f32 %v278_v46, %v1664_v14 }
 0x13e   :  { %v1130_v51 = vpop.eup %1129  ;;  %v292_v52 = vadd.f32 1e-05, %v288_v48  ;;  %v290_v53 = vadd.f32 1e-05, %v286_v49 }
 0x13f   :  { %v1132_v54 = vpop.eup %1131  ;;  %v294_v55 = vmul.f32 %v1130_v51, %v289_v43  ;;  %vm300_vm4 = vweird.f32 %v1130_v51 }
 0x140   :  { %v314_v56 = vmul.f32 %v1132_v54, %v291_v44  ;;  %1133 = vrsqrt.f32 %v292_v52  ;;  %vm320_vm3 = vweird.f32 %v1132_v54  ;;  %vm301_vm7 = vmor %vm299_vm5, %vm300_vm4  ;;  %vm329_vm8 = vweird.f32 %v292_v52 }
 0x141   :  { %v295_v57 = vmul.f32 %v1130_v51, %v294_v55  ;;  %1135 = vrsqrt.f32 %v290_v53  ;;  %vm321_vm6 = vmor %vm319_vm2, %vm320_vm3  ;;  %vm309_vm12 = vweird.f32 %v290_v53 }
 0x142   :  { %v315_v58 = vmul.f32 %v1132_v54, %v314_v56 }
 0x143   :  { %v296_v59 = vmul.f32 0.5, %v295_v57 }
 0x144   :  { %v316_v60 = vmul.f32 0.5, %v315_v58 }
 0x145   :  { %v297_v61 = vsub.f32 1.5, %v296_v59 }
 0x146   :  { %v1134_v62 = vpop.eup %1133  ;;  %v317_v63 = vsub.f32 1.5, %v316_v60 }
 0x147   :  { %v1136_v2 = vpop.eup %1135  ;;  %v324_v3 = vmul.f32 %v1134_v62, %v292_v52  ;;  %v298_v6 = vmul.f32 %v1130_v51, %v297_v61  ;;  %vm330_vm9 = vweird.f32 %v1134_v62 }
 0x148   :  { %v318_v7 = vmul.f32 %v1132_v54, %v317_v63  ;;  %v304_v8 = vmul.f32 %v1136_v2, %v290_v53  ;;  %vm310_vm10 = vweird.f32 %v1136_v2  ;;  %vm331_vm11 = vmor %vm329_vm8, %vm330_vm9 }
 0x149   :  { %v325_v9 = vmul.f32 %v1134_v62, %v324_v3  ;;  %v302_v13 = vsel %vm301_vm7, %v1130_v51, %v298_v6  ;;  %vm311_vm13 = vmor %vm309_vm12, %vm310_vm10 }
 0x14a   :  { %v305_v10 = vmul.f32 %v1136_v2, %v304_v8  ;;  %v322_v11 = vsel %vm321_vm6, %v1132_v54, %v318_v7  ;;  %v333_v22 = vmul.f32 %v302_v13, %v1672_v20 }
 0x14b   :  { %v326_v12 = vmul.f32 0.5, %v325_v9  ;;  %v335_v17 = vmul.f32 %v322_v11, %v1669_v19  ;;  %v1118_v19 = vld [vmem:[%s1860_s27] ss:$0 sm:$0xff] }
 0x14c   :  { %v306_v15 = vmul.f32 0.5, %v305_v10  ;;  %v341_v32 = vmul.f32 %v1117_v21, %v333_v22 }
 0x14d   :  { %v327_v16 = vsub.f32 1.5, %v326_v12  ;;  %v343_v28 = vmul.f32 %v1117_v21, %v335_v17 }
 0x14e   :  { %v307_v18 = vsub.f32 1.5, %v306_v15  ;;  %v349_v36 = vadd.f32 %v1118_v19, %v341_v32  ;;  %v1082_v32 = vld [vmem:[#allocation16] sm:$0xff] }
 0x14f   :  { %v328_v23 = vmul.f32 %v1134_v62, %v327_v16  ;;  %v351_v20 = vadd.f32 %v1118_v19, %v343_v28 }
 0x150   :  { %v308_v24 = vmul.f32 %v1136_v2, %v307_v18 }
 0x151   :  { %v332_v25 = vsel %vm331_vm11, %v1134_v62, %v328_v23 }
 0x152   :  { %v336_v26 = vmul.f32 %v332_v25, %v1683_v29  ;;  %v312_v27 = vsel %vm311_vm13, %v1136_v2, %v308_v24  ;;  %v1083_v25 = vld [vmem:[#allocation16 + $0x8] sm:$0xff] }
 0x153   :  { %v334_v31 = vmul.f32 %v312_v27, %v1686_v30  ;;  %v1119_v30 = vld [vmem:[#allocation9] ss:$0 sm:$0xff]  ;;  %596 = vmatpush.bf16.msrb.mxu3 %v1083_v25 }
 0x154   :  { %v344_v33 = vmul.f32 %v1117_v21, %v336_v26 }
 0x155   :  { %v342_v34 = vmul.f32 %v1117_v21, %v334_v31 }
 0x156   :  { %v352_v35 = vadd.f32 %v1118_v19, %v344_v33 }
 0x157   :  { %v350_v37 = vadd.f32 %v1118_v19, %v342_v34  ;;  %597 = vmatpush.bf16.msrb.mxu3 %v1082_v32 }
 0x158   :  { %v354_v38 = vpack.c.bf16 %v352_v35, %v351_v20 }
 0x159   :  { %v353_v39 = vpack.c.bf16 %v350_v37, %v349_v36 }
 0x15a   :  { %1011 = vmatmul.msk.bf16.vlgmr.msra.gmra.mxu2 %vm241_vm0, %v354_v38  ;;  %1021 = vmatmul.msk.bf16.vlgmr.msra.gmra.mxu3 %vm241_vm0, %v354_v38 }
 0x15b   :  { %1010 = vmatmul.msk.bf16.vlgmr.msra.gmra.mxu0 %vm241_vm0, %v353_v39  ;;  %1020 = vmatmul.msk.bf16.vlgmr.msra.gmra.mxu1 %vm241_vm0, %v353_v39 }
 0x16a   :  { %1030 = vmatmul.msk.bf16.vlgmr.msrb.gmra.mxu2 %vm241_vm0, %v353_v39 }
 0x17a   :  { %1031 = vmatmul.msk.bf16.gmra.mxu2 %vm241_vm0, %v354_v38 }
 0x1d8   :  { %v390_v29 = vpop.f32.mrf.mxu0  ;;  %v429_v33 = vpop.f32.mrf.mxu1 }
 0x1d9   :  { %v391_v41 = vadd.f32 %v1119_v30, %v390_v29 }
 0x1db   :  { %v478_v44 = vsel %vm241_vm0, %v391_v41, -inf }
 0x1dd   :  { %v395_v40 = vpop.f32.mrf.mxu2  ;;  %v434_v38 = vpop.f32.mrf.mxu3 }
 0x1de   :  { %v396_v46 = vadd.f32 %v1119_v30, %v395_v40  ;;  %v1120_v40 = vld [vmem:[#allocation12] ss:$0 sm:$0xff] }
 0x1e0   :  { %v392_v42 = vpop.f32.mrf.mxu0  ;;  %v487_v51 = vsel %vm241_vm0, %v396_v46, -inf }
 0x1e1   :  { %v393_v43 = vadd.f32 %v1119_v30, %v392_v42  ;;  %v431_v42 = vpop.f32.mrf.mxu1 }
 0x1e3   :  { %v479_v45 = vsel %vm241_vm0, %v393_v43, -inf }
 0x1e4   :  { %v480_v47 = vmax.f32 %v478_v44, %v479_v45  ;;  %v430_v44 = vadd.f32 %v1120_v40, %v429_v33  ;;  %v432_v45 = vadd.f32 %v1120_v40, %v431_v42 }
 0x1e5   :  { %v397_v48 = vpop.f32.mrf.mxu2 }
 0x1e6   :  { %v481_v49 = vrot.slane %v480_v47, 4  ;;  %v398_v50 = vadd.f32 %v1119_v30, %v397_v48 }
 0x1e8   :  { %v482_v52 = vmax.f32 %v480_v47, %v481_v49  ;;  %v488_v53 = vsel %vm241_vm0, %v398_v50, -inf }
 0x1e9   :  { %v489_v54 = vmax.f32 %v487_v51, %v488_v53 }
 0x1ea   :  { %v483_v55 = vrot.slane %v482_v52, 2 }
 0x1eb   :  { %v490_v56 = vrot.slane %v489_v54, 4 }
 0x1ec   :  { %v484_v57 = vmax.f32 %v482_v52, %v483_v55  ;;  %v435_v52 = vadd.f32 %v1120_v40, %v434_v38 }
 0x1ed   :  { %v491_v58 = vmax.f32 %v489_v54, %v490_v56  ;;  %v468_v30 = vpop.f32.mrf.mxu2 }
 0x1ee   :  { %v485_v59 = vrot.slane %v484_v57, 1 }
 0x1ef   :  { %v492_v60 = vrot.slane %v491_v58, 2 }
 0x1f0   :  { %v486_v61 = vmax.f32 %v484_v57, %v485_v59 }
 0x1f1   :  { %v493_v62 = vmax.f32 %v491_v58, %v492_v60 }
 0x1f2   :  { %v496_v63 = vsub.f32 %v391_v41, %v486_v61  ;;  %v497_v2 = vsub.f32 %v393_v43, %v486_v61 }
 0x1f3   :  { %v494_v3 = vrot.slane %v493_v62, 1 }
 0x1f4   :  { %v500_v6 = vmul.f32 1.442695, %v496_v63  ;;  %v502_v7 = vmul.f32 1.442695, %v497_v2  ;;  %v1121_v63 = vld [vmem:[#allocation15] ss:$0 sm:$0xff]  ;;  %v615_v2 = vstv %s614_s10 }
 0x1f5   :  { %v495_v8 = vmax.f32 %v493_v62, %v494_v3  ;;  %v470_v55 = vpop.f32.mrf.mxu2  ;;  %vm621_vm14 = vweird.f32 %v615_v2 }
 0x1f6   :  { %1137 = vpow2.f32 %v500_v6 }
 0x1f7   :  { %1139 = vpow2.f32 %v502_v7  ;;  %v498_v9 = vsub.f32 %v396_v46, %v495_v8  ;;  %v499_v10 = vsub.f32 %v398_v50, %v495_v8  ;;  %v436_v50 = vpop.f32.mrf.mxu3  ;;  %v657_v8 = vstv %s656_s26 }
 0x1f8   :  { %v437_v57 = vadd.f32 %v1120_v40, %v436_v50  ;;  %vm663_vm1 = vweird.f32 %v657_v8  ;;  %v667_v33 = vand.u32 2147483647, %v657_v8 }
 0x1f9   :  { %v504_v11 = vmul.f32 1.442695, %v498_v9  ;;  %v506_v12 = vmul.f32 1.442695, %v499_v10  ;;  %v469_v10 = vadd.f32 %v1121_v63, %v468_v30 }
 0x1fa   :  { %vm668_vm6 = vcmp.eq.f32.partialorder %v667_v33, 8.507059e+37 }
 0x1fb   :  { %1141 = vpow2.f32 %v504_v11 }
 0x1fc   :  { %v1138_v13 = vpop.eup %1137  ;;  %1143 = vpow2.f32 %v506_v12  ;;  %v471_v12 = vadd.f32 %v1121_v63, %v470_v55 }
 0x1fd   :  { %v1140_v15 = vpop.eup %1139  ;;  %v508_v16 = vsel %vm241_vm0, %v1138_v13, 0.0 }
 0x1fe   :  { %v509_v17 = vsel %vm241_vm0, %v1140_v15, 0.0 }
 0x1ff   :  { %v510_v18 = vadd.f32 %v509_v17, %v508_v16 }
 0x201   :  { %v1142_v21 = vpop.eup %1141  ;;  %v511_v22 = vrot.slane %v510_v18, 4 }
 0x202   :  { %v1144_v23 = vpop.eup %1143  ;;  %v517_v24 = vsel %vm241_vm0, %v1142_v21, 0.0 }
 0x203   :  { %v512_v26 = vadd.f32 %v511_v22, %v510_v18  ;;  %v518_v27 = vsel %vm241_vm0, %v1144_v23, 0.0  ;;  %v473_v18 = vpop.f32.mrf.mxu2  ;;  %v554_v22 = vmax.f32 %v469_v10, 0.0 }
 0x204   :  { %v519_v19 = vadd.f32 %v518_v27, %v517_v24  ;;  %v627_v27 = vand.u32 2147483648, %v615_v2 }
 0x205   :  { %v513_v28 = vrot.slane %v512_v26, 2 }
 0x206   :  { %v520_v31 = vrot.slane %v519_v19, 4  ;;  %v628_v38 = vor.u32 1.1754944e-38, %v627_v27 }
 0x207   :  { %v514_v34 = vadd.f32 %v513_v28, %v512_v26  ;;  %v625_v26 = vand.u32 2147483647, %v615_v2 }
 0x208   :  { %v521_v20 = vadd.f32 %v520_v31, %v519_v19 }
 0x209   :  { %v515_v35 = vrot.slane %v514_v34, 1  ;;  %vm626_vm4 = vcmp.eq.f32.partialorder %v625_v26, 8.507059e+37 }
 0x20a   :  { %v522_v36 = vrot.slane %v521_v20, 2 }
 0x20b   :  { %v516_v37 = vadd.f32 %v515_v35, %v514_v34  ;;  %v669_v34 = vand.u32 2147483648, %v657_v8 }
 0x20c   :  { %v523_v39 = vadd.f32 %v522_v36, %v521_v20 }
 0x20d   :  { %1145 = vrcp.f32 %v516_v37 }
 0x20e   :  { %v524_v29 = vrot.slane %v523_v39, 1 }
 0x210   :  { %v525_v41 = vadd.f32 %v524_v29, %v523_v39 }
 0x212   :  { %1147 = vrcp.f32 %v525_v41  ;;  %v670_v41 = vor.u32 1.1754944e-38, %v669_v34 }
 0x213   :  { %v1146_v43 = vpop.eup %1145  ;;  %1149 = vrcp.f32 %v615_v2 }
 0x214   :  { %v528_v46 = vmul.f32 %v1146_v43, %v1138_v13  ;;  %v529_v47 = vmul.f32 %v1146_v43, %v1140_v15  ;;  %1151 = vrcp.f32 %v657_v8 }
 0x216   :  { %v532_v48 = vmul.f32 %v528_v46, %v430_v44  ;;  %v533_v49 = vmul.f32 %v529_v47, %v432_v45  ;;  %v475_v44 = vpop.f32.mrf.mxu2 }
 0x217   :  { %v476_v50 = vadd.f32 %v1121_v63, %v475_v44 }
 0x218   :  { %v1148_v51 = vpop.eup %1147  ;;  %v536_v53 = vsel %vm241_vm0, %v532_v48, 0.0  ;;  %v537_v54 = vsel %vm241_vm0, %v533_v49, 0.0  ;;  %v474_v49 = vadd.f32 %v1121_v63, %v473_v18 }
 0x219   :  { %v538_v56 = vadd.f32 %v537_v54, %v536_v53  ;;  %v530_v58 = vmul.f32 %v1148_v51, %v1142_v21  ;;  %v531_v59 = vmul.f32 %v1148_v51, %v1144_v23  ;;  %v1150_v16 = vpop.eup %1149  ;;  %v555_v23 = vmax.f32 %v471_v12, 0.0 }
 0x21a   :  { %v617_v24 = vmul.f32 %v1150_v16, %v615_v2  ;;  %v1152_v25 = vpop.eup %1151  ;;  %vm622_vm15 = vweird.f32 %v1150_v16  ;;  %v557_v53 = vmax.f32 %v476_v50, 0.0 }
 0x21b   :  { %v539_v60 = vrot.slane %v538_v56, 4  ;;  %v534_v61 = vmul.f32 %v530_v58, %v435_v52  ;;  %v535_v62 = vmul.f32 %v531_v59, %v437_v57  ;;  %v659_v32 = vmul.f32 %v1152_v25, %v657_v8  ;;  %vm623_vm3 = vmor %vm621_vm14, %vm622_vm15  ;;  %v1122_v57 = vld [vmem:[#allocation18] ss:$0 sm:$0xff] }
 0x21c   :  { %v618_v31 = vsub.f32 1.0, %v617_v24  ;;  %vm664_vm2 = vweird.f32 %v1152_v25  ;;  %v556_v52 = vmax.f32 %v474_v49, 0.0 }
 0x21d   :  { %v540_v3 = vadd.f32 %v539_v60, %v538_v56  ;;  %v545_v6 = vsel %vm241_vm0, %v534_v61, 0.0  ;;  %v546_v7 = vsel %vm241_vm0, %v535_v62, 0.0  ;;  %v660_v37 = vsub.f32 1.0, %v659_v32  ;;  %vm665_vm5 = vmor %vm663_vm1, %vm664_vm2 }
 0x21e   :  { %v547_v9 = vadd.f32 %v546_v7, %v545_v6  ;;  %v619_v36 = vmul.f32 %v1150_v16, %v618_v31 }
 0x21f   :  { %v541_v11 = vrot.slane %v540_v3, 2  ;;  %v661_v40 = vmul.f32 %v1152_v25, %v660_v37 }
 0x220   :  { %v548_v13 = vrot.slane %v547_v9, 4  ;;  %v620_v30 = vadd.f32 %v1150_v16, %v619_v36 }
 0x221   :  { %v542_v15 = vadd.f32 %v541_v11, %v540_v3  ;;  %v662_v43 = vadd.f32 %v1152_v25, %v661_v40 }
 0x222   :  { %v549_v17 = vadd.f32 %v548_v13, %v547_v9  ;;  %v624_v42 = vsel %vm623_vm3, %v1150_v16, %v620_v30 }
 0x223   :  { %v543_v21 = vrot.slane %v542_v15, 1  ;;  %v629_v45 = vsel %vm626_vm4, %v628_v38, %v624_v42  ;;  %v666_v47 = vsel %vm665_vm5, %v1152_v25, %v662_v43 }
 0x224   :  { %v550_v28 = vrot.slane %v549_v17, 2  ;;  %1094 = vpush %v629_v45  ;;  %v671_v48 = vsel %vm668_vm6, %v670_v41, %v666_v47  ;;  %v1085_v45 = vld [vmem:[%s1847_s14 + $0x8] sm:$0xff] }
 0x225   :  { %v544_v19 = vadd.f32 %v543_v21, %v542_v15  ;;  %1096 = vpush %v671_v48  ;;  %817 = vmatpush.bf16.msrb.mxu0 %v1085_v45  ;;  %v1084_v48 = vld [vmem:[%s1847_s14] sm:$0xff] }
 0x226   :  { %v551_v29 = vadd.f32 %v550_v28, %v549_v17  ;;  %v1089_v45 = vld [vmem:[#allocation20 + $0x18] sm:$0xff] }
 0x227   :  { %v558_v20 = vmul.f32 %v554_v22, %v544_v19  ;;  %v559_v35 = vmul.f32 %v555_v23, %v544_v19  ;;  %943 = vmatpush.bf16.msrb.mxu1 %v1089_v45 }
 0x228   :  { %v552_v46 = vrot.slane %v551_v29, 1 }
 0x229   :  { %v562_v39 = vpack.c.bf16 %v559_v35, %v558_v20  ;;  %818 = vmatpush.bf16.msrb.mxu0 %v1084_v48 }
 0x22a   :  { %v553_v51 = vadd.f32 %v552_v46, %v551_v29 }
 0x22b   :  { %1040 = vmatmul.msk.bf16.vlgmr.msrb.gmra.mxu3 %vm241_vm0, %v562_v39 }
 0x22c   :  { %v560_v54 = vmul.f32 %v556_v52, %v553_v51  ;;  %v561_v55 = vmul.f32 %v557_v53, %v553_v51 }
 0x22e   :  { %v563_v56 = vpack.c.bf16 %v561_v55, %v560_v54 }
 0x23b   :  { %1041 = vmatmul.msk.bf16.gmra.mxu3 %vm241_vm0, %v563_v56 }
 0x255   :  { %s1095_s4 = spop %1094 }
 0x256   :  { %s637_s9 = smul.f32 %s1095_s4, %s1724_s8 }
 0x257   :  { %s631_s28 = smul.f32 %s1095_s4, %s1722_s21 }
 0x258   :  { %v638_v58 = vstv %s637_s9 }
 0x259   :  { %v632_v59 = vstv %s631_s28  ;;  %v639_v61 = vmul.f32 %v638_v58, %v1650_v1  ;;  %v640_v6 = vmul.f32 %v638_v58, %v1658_v5  ;;  %v641_v13 = vmul.f32 %v638_v58, %v1648_v0 }
 0x25a   :  { %v642_v22 = vmul.f32 %v638_v58, %v1656_v4 }
 0x2ae   :  { %v599_v60 = vpop.f32.mrf.mxu3 }
 0x2af   :  { %v600_v62 = vadd.f32 %v1122_v57, %v599_v60 }
 0x2b1   :  { %v633_v63 = vmul.f32 %v632_v59, %v600_v62 }
 0x2b3   :  { %v643_v2 = vadd.f32 %v639_v61, %v633_v63 }
 0x2b5   :  { %647 = vst.msk [vmem:[#allocation2] sm:$0xff] %vm241_vm0, %v643_v2 }
 0x2b6   :  { %v601_v3 = vpop.f32.mrf.mxu3 }
 0x2b7   :  { %v602_v7 = vadd.f32 %v1122_v57, %v601_v3 }
 0x2b9   :  { %v634_v8 = vmul.f32 %v632_v59, %v602_v7 }
 0x2bb   :  { %v644_v9 = vadd.f32 %v640_v6, %v634_v8 }
 0x2bc   :  { %v1748_v10 = vld [vmem:[#allocation2] sm:$0xff] }
 0x2bd   :  { %648 = vst.msk [vmem:[#allocation2 + $0x8] sm:$0xff] %vm241_vm0, %v644_v9  ;;  %v679_v11 = vsel %vm241_vm0, %v1748_v10, 0.0 }
 0x2be   :  { %680 = vadd.xlane.f32.xlu2 %v679_v11  ;;  %v604_v1 = vpop.f32.mrf.mxu3 }
 0x2bf   :  { %v605_v12 = vadd.f32 %v1122_v57, %v604_v1 }
 0x2c1   :  { %v635_v15 = vmul.f32 %v632_v59, %v605_v12 }
 0x2c3   :  { %v645_v16 = vadd.f32 %v641_v13, %v635_v15  ;;  %v1123_v13 = vld [vmem:[%s1845_s12] ss:$0 sm:$0xff] }
 0x2c4   :  { %v1754_v17 = vld [vmem:[#allocation2 + $0x8] sm:$0xff] }
 0x2c5   :  { %649 = vst.msk [vmem:[#allocation2 + $0x10] sm:$0xff] %vm241_vm0, %v645_v16  ;;  %v682_v5 = vsel %vm241_vm0, %v1754_v17, 0.0 }
 0x2c6   :  { %683 = vadd.xlane.f32.xlu0 %v682_v5  ;;  %v606_v18 = vpop.f32.mrf.mxu3 }
 0x2c7   :  { %v607_v21 = vadd.f32 %v1122_v57, %v606_v18 }
 0x2c9   :  { %v636_v23 = vmul.f32 %v632_v59, %v607_v21 }
 0x2cb   :  { %v646_v24 = vadd.f32 %v642_v22, %v636_v23 }
 0x2cc   :  { %v1760_v25 = vld [vmem:[#allocation2 + $0x10] sm:$0xff] }
 0x2cd   :  { %650 = vst.msk [vmem:[#allocation2 + $0x18] sm:$0xff] %vm241_vm0, %v646_v24  ;;  %v685_v0 = vsel %vm241_vm0, %v1760_v25, 0.0 }
 0x2ce   :  { %686 = vadd.xlane.f32.xlu1 %v685_v0 }
 0x2d4   :  { %v1765_v26 = vld [vmem:[#allocation2 + $0x18] sm:$0xff] }
 0x2d5   :  { %v688_v27 = vsel %vm241_vm0, %v1765_v26, 0.0 }
 0x2d6   :  { %689 = vadd.xlane.f32.xlu2 %v688_v27 }
 0x331   :  { %v681_v19 = vpop.xlane.xlu2 %680 }
 0x332   :  { %v691_v28 = vmul.f32 %v681_v19, %v1664_v14 }
 0x334   :  { %v695_v4 = vsub.f32 %v1748_v10, %v691_v28 }
 0x336   :  { %v699_v31 = vmul.f32 %v695_v4, %v695_v4 }
 0x338   :  { %v703_v32 = vsel %vm241_vm0, %v699_v31, 0.0 }
 0x339   :  { %v684_v33 = vpop.xlane.xlu0 %683  ;;  %704 = vadd.xlane.f32.xlu0 %v703_v32 }
 0x33a   :  { %v692_v34 = vmul.f32 %v684_v33, %v1664_v14 }
 0x33c   :  { %v696_v20 = vsub.f32 %v1754_v17, %v692_v34 }
 0x33e   :  { %v700_v35 = vmul.f32 %v696_v20, %v696_v20 }
 0x340   :  { %v706_v36 = vsel %vm241_vm0, %v700_v35, 0.0 }
 0x341   :  { %707 = vadd.xlane.f32.xlu1 %v706_v36  ;;  %v687_v37 = vpop.xlane.xlu1 %686 }
 0x342   :  { %v693_v38 = vmul.f32 %v687_v37, %v1664_v14 }
 0x344   :  { %v1777_v39 = vsub.f32 %v1760_v25, %v693_v38 }
 0x346   :  { %v701_v29 = vmul.f32 %v1777_v39, %v1777_v39 }
 0x348   :  { %v709_v30 = vsel %vm241_vm0, %v701_v29, 0.0 }
 0x349   :  { %v690_v40 = vpop.xlane.xlu2 %689  ;;  %710 = vadd.xlane.f32.xlu2 %v709_v30 }
 0x34a   :  { %v694_v41 = vmul.f32 %v690_v40, %v1664_v14 }
 0x34c   :  { %v1784_v42 = vsub.f32 %v1765_v26, %v694_v41 }
 0x34e   :  { %v702_v43 = vmul.f32 %v1784_v42, %v1784_v42 }
 0x350   :  { %v712_v44 = vsel %vm241_vm0, %v702_v43, 0.0 }
 0x351   :  { %713 = vadd.xlane.f32.xlu0 %v712_v44 }
 0x3ac   :  { %v705_v46 = vpop.xlane.xlu0 %704 }
 0x3ad   :  { %v715_v47 = vmul.f32 %v705_v46, %v1664_v14  ;;  %v1125_v46 = vld [vmem:[%s1848_s15] ss:$0 sm:$0xff]  ;;  %s1097_s15 = spop %1096 }
 0x3ae   :  { %s673_s29 = smul.f32 %s1097_s15, %s1726_s22  ;;  %s982_s22 = sshll.u32 %s1852_s19, 4  ;;  %s983_s22 = int_to_ptr.hbm [resolvable:$true] %s982_s22 }
 0x3af   :  { %v719_v49 = vadd.f32 1e-05, %v715_v47  ;;  %s674_s1 = smul.f32 %s1097_s15, %s1728_s20 }
 0x3b1   :  { %1153 = vrsqrt.f32 %v719_v49  ;;  %vm729_vm8 = vweird.f32 %v719_v49 }
 0x3b4   :  { %v708_v50 = vpop.xlane.xlu1 %707 }
 0x3b5   :  { %v716_v51 = vmul.f32 %v708_v50, %v1664_v14 }
 0x3b7   :  { %v1154_v52 = vpop.eup %1153  ;;  %v720_v53 = vadd.f32 1e-05, %v716_v51  ;;  %v1086_v51 = vld [vmem:[#allocation20] sm:$0xff] }
 0x3b8   :  { %v724_v54 = vmul.f32 %v1154_v52, %v719_v49  ;;  %vm730_vm7 = vweird.f32 %v1154_v52  ;;  %v1087_v49 = vld [vmem:[#allocation20 + $0x8] sm:$0xff] }
 0x3b9   :  { %1155 = vrsqrt.f32 %v720_v53  ;;  %vm731_vm9 = vmor %vm729_vm8, %vm730_vm7  ;;  %vm739_vm11 = vweird.f32 %v720_v53  ;;  %vm932_vm8 = vcmask 523264  }
 0x3ba   :  { %v725_v55 = vmul.f32 %v1154_v52, %v724_v54 }
 0x3bc   :  { %v726_v56 = vmul.f32 0.5, %v725_v55  ;;  %v711_v57 = vpop.xlane.xlu2 %710 }
 0x3bd   :  { %v717_v58 = vmul.f32 %v711_v57, %v1664_v14 }
 0x3be   :  { %v727_v59 = vsub.f32 1.5, %v726_v56 }
 0x3bf   :  { %v1156_v60 = vpop.eup %1155  ;;  %v721_v61 = vadd.f32 1e-05, %v717_v58 }
 0x3c0   :  { %v728_v62 = vmul.f32 %v1154_v52, %v727_v59  ;;  %v734_v63 = vmul.f32 %v1156_v60, %v720_v53  ;;  %vm740_vm10 = vweird.f32 %v1156_v60 }
 0x3c1   :  { %1157 = vrsqrt.f32 %v721_v61  ;;  %vm741_vm12 = vmor %vm739_vm11, %vm740_vm10  ;;  %vm749_vm14 = vweird.f32 %v721_v61 }
 0x3c2   :  { %v735_v2 = vmul.f32 %v1156_v60, %v734_v63  ;;  %v732_v3 = vsel %vm731_vm9, %v1154_v52, %v728_v62 }
 0x3c3   :  { %v763_v1 = vmul.f32 %v732_v3, %v695_v4 }
 0x3c4   :  { %v736_v6 = vmul.f32 0.5, %v735_v2  ;;  %v714_v7 = vpop.xlane.xlu0 %713 }
 0x3c5   :  { %v718_v8 = vmul.f32 %v714_v7, %v1664_v14  ;;  %v771_v22 = vmul.f32 %v1123_v13, %v763_v1  ;;  %v1124_v14 = vld [vmem:[%s1846_s13] ss:$0 sm:$0xff] }
 0x3c6   :  { %v737_v9 = vsub.f32 1.5, %v736_v6 }
 0x3c7   :  { %v1158_v11 = vpop.eup %1157  ;;  %v722_v12 = vadd.f32 1e-05, %v718_v8  ;;  %v779_v19 = vadd.f32 %v1124_v14, %v771_v22 }
 0x3c8   :  { %v738_v15 = vmul.f32 %v1156_v60, %v737_v9  ;;  %v744_v16 = vmul.f32 %v1158_v11, %v721_v61  ;;  %vm750_vm13 = vweird.f32 %v1158_v11 }
 0x3c9   :  { %1159 = vrsqrt.f32 %v722_v12  ;;  %vm751_vm15 = vmor %vm749_vm14, %vm750_vm13  ;;  %vm759_vm2 = vweird.f32 %v722_v12 }
 0x3ca   :  { %v742_v5 = vsel %vm741_vm12, %v1156_v60, %v738_v15  ;;  %v745_v18 = vmul.f32 %v1158_v11, %v744_v16 }
 0x3cb   :  { %v764_v21 = vmul.f32 %v742_v5, %v696_v20 }
 0x3cc   :  { %v746_v23 = vmul.f32 0.5, %v745_v18 }
 0x3cd   :  { %v772_v24 = vmul.f32 %v1123_v13, %v764_v21 }
 0x3ce   :  { %v747_v0 = vsub.f32 1.5, %v746_v23 }
 0x3cf   :  { %v1160_v27 = vpop.eup %1159  ;;  %v780_v28 = vadd.f32 %v1124_v14, %v772_v24 }
 0x3d0   :  { %v748_v4 = vmul.f32 %v1158_v11, %v747_v0  ;;  %v754_v31 = vmul.f32 %v1160_v27, %v722_v12  ;;  %vm760_vm1 = vweird.f32 %v1160_v27 }
 0x3d1   :  { %v783_v32 = vpack.c.bf16 %v780_v28, %v779_v19  ;;  %vm761_vm3 = vmor %vm759_vm2, %vm760_vm1 }
 0x3d2   :  { %v755_v33 = vmul.f32 %v1160_v27, %v754_v31  ;;  %v752_v34 = vsel %vm751_vm15, %v1158_v11, %v748_v4 }
 0x3d3   :  { %1052 = vmatmul.msk.bf16.vlgmr.msrb.gmra.mxu0 %vm241_vm0, %v783_v32  ;;  %v765_v36 = vmul.f32 %v752_v34, %v1777_v39  ;;  %v1088_v39 = vld [vmem:[#allocation20 + $0x10] sm:$0xff] }
 0x3d4   :  { %v756_v20 = vmul.f32 0.5, %v755_v33  ;;  %944 = vmatpush.bf16.msrb.mxu1 %v1088_v39 }
 0x3d5   :  { %v773_v30 = vmul.f32 %v1123_v13, %v765_v36 }
 0x3d6   :  { %v757_v35 = vsub.f32 1.5, %v756_v20 }
 0x3d7   :  { %v781_v41 = vadd.f32 %v1124_v14, %v773_v30 }
 0x3d8   :  { %v758_v37 = vmul.f32 %v1160_v27, %v757_v35  ;;  %945 = vmatpush.bf16.msrb.mxu1 %v1087_v49 }
 0x3da   :  { %v762_v38 = vsel %vm761_vm3, %v1160_v27, %v758_v37 }
 0x3db   :  { %v766_v29 = vmul.f32 %v762_v38, %v1784_v42 }
 0x3dc   :  { %946 = vmatpush.bf16.msrb.mxu1 %v1086_v51  ;;  %v958_v51 = vstv %s673_s29 }
 0x3dd   :  { %v774_v40 = vmul.f32 %v1123_v13, %v766_v29 }
 0x3df   :  { %v782_v43 = vadd.f32 %v1124_v14, %v774_v40 }
 0x3e1   :  { %v784_v44 = vpack.c.bf16 %v782_v43, %v781_v41 }
 0x3e3   :  { %1053 = vmatmul.msk.bf16.gmra.mxu0 %vm241_vm0, %v784_v44 }
 0x450   :  { %v820_v47 = vpop.f32.mrf.mxu0 }
 0x451   :  { %v821_v48 = vadd.f32 %v1125_v46, %v820_v47 }
 0x453   :  { %v830_v50 = vpack.c.bf16 %v821_v48, %v821_v48 }
 0x455   :  { %v834_v42 = vunpack.c.l.bf16 %v830_v50 }
 0x457   :  { %v842_v52 = vmin.f32 %v834_v42, 0.0  ;;  %vm838_vm4 = vcmp.gt.f32.partialorder %v834_v42, 0.0  ;;  %v1126_v42 = vld [vmem:[%s1850_s17] ss:$0 sm:$0xff]  ;;  %s1493_s17 = smov [#allocation24]  }
 0x458   :  { %v822_v53 = vpop.f32.mrf.mxu0  ;;  %vm878_vm6 = vmpackc.low %vm838_vm4, %vm838_vm4  ;;  %s980_s2 = sshll.u32 %s1493_s17, 4  ;;  %s981_s2 = int_to_ptr.vmem [resolvable:$true] %s980_s2 }
 0x459   :  { %v846_v54 = vpack.c.bf16 %v842_v52, %v842_v52  ;;  %v823_v55 = vadd.f32 %v1125_v46, %v822_v53  ;;  %v963_v52 = vstv %s674_s1 }
 0x45b   :  { %v850_v56 = vunpack.c.l.bf16 %v846_v54  ;;  %v831_v57 = vpack.c.bf16 %v823_v55, %v823_v55  ;;  %v964_v55 = vmul.f32 %v963_v52, %v1748_v10 }
 0x45d   :  { %v854_v58 = vmul.f32 1.442695, %v850_v56  ;;  %v835_v59 = vunpack.c.l.bf16 %v831_v57 }
 0x45f   :  { %1161 = vpow2.f32 %v854_v58  ;;  %v843_v60 = vmin.f32 %v835_v59, 0.0  ;;  %vm839_vm5 = vcmp.gt.f32.partialorder %v835_v59, 0.0 }
 0x460   :  { %v825_v61 = vpop.f32.mrf.mxu0  ;;  %vm879_vm7 = vmpackc.low %vm839_vm5, %vm839_vm5 }
 0x461   :  { %v847_v62 = vpack.c.bf16 %v843_v60, %v843_v60  ;;  %v826_v63 = vadd.f32 %v1125_v46, %v825_v61  ;;  %v965_v60 = vmul.f32 %v963_v52, %v1754_v17  ;;  %v967_v17 = vmul.f32 %v963_v52, %v1765_v26 }
 0x463   :  { %v851_v2 = vunpack.c.l.bf16 %v847_v62  ;;  %v832_v3 = vpack.c.bf16 %v826_v63, %v826_v63 }
 0x465   :  { %v1162_v6 = vpop.eup %1161  ;;  %v856_v7 = vmul.f32 1.442695, %v851_v2  ;;  %v836_v8 = vunpack.c.l.bf16 %v832_v3 }
 0x466   :  { %v862_v9 = vpack.c.bf16 %v1162_v6, %v1162_v6 }
 0x467   :  { %1163 = vpow2.f32 %v856_v7  ;;  %v844_v11 = vmin.f32 %v836_v8, 0.0  ;;  %vm840_vm9 = vcmp.gt.f32.partialorder %v836_v8, 0.0 }
 0x468   :  { %v866_v1 = vunpack.c.l.bf16 %v862_v9  ;;  %v827_v12 = vpop.f32.mrf.mxu0  ;;  %vm880_vm11 = vmpackc.low %vm840_vm9, %vm840_vm9 }
 0x469   :  { %v848_v13 = vpack.c.bf16 %v844_v11, %v844_v11  ;;  %v828_v15 = vadd.f32 %v1125_v46, %v827_v12 }
 0x46a   :  { %v1054_v18 = vadd.f32 -1.0, %v866_v1 }
 0x46b   :  { %v852_v16 = vunpack.c.l.bf16 %v848_v13  ;;  %v833_v5 = vpack.c.bf16 %v828_v15, %v828_v15 }
 0x46c   :  { %v874_v0 = vpack.c.bf16 %v1054_v18, %v1054_v18 }
 0x46d   :  { %v1164_v21 = vpop.eup %1163  ;;  %v858_v22 = vmul.f32 1.442695, %v852_v16  ;;  %v837_v14 = vunpack.c.l.bf16 %v833_v5 }
 0x46e   :  { %v863_v23 = vpack.c.bf16 %v1164_v21, %v1164_v21  ;;  %v882_v31 = vsel %vm878_vm6, %v830_v50, %v874_v0 }
 0x46f   :  { %1165 = vpow2.f32 %v858_v22  ;;  %v845_v24 = vmin.f32 %v837_v14, 0.0  ;;  %v902_v36 = vunpack.c.l.b16 %v882_v31  ;;  %vm841_vm10 = vcmp.gt.f32.partialorder %v837_v14, 0.0 }
 0x470   :  { %v867_v27 = vunpack.c.l.bf16 %v863_v23  ;;  %vm881_vm12 = vmpackc.low %vm841_vm10, %vm841_vm10 }
 0x471   :  { %v849_v19 = vpack.c.bf16 %v845_v24, %v845_v24 }
 0x472   :  { %v1055_v28 = vadd.f32 -1.0, %v867_v27 }
 0x473   :  { %v853_v4 = vunpack.c.l.bf16 %v849_v19 }
 0x474   :  { %v875_v32 = vpack.c.bf16 %v1055_v28, %v1055_v28 }
 0x475   :  { %v1166_v33 = vpop.eup %1165  ;;  %v860_v34 = vmul.f32 1.442695, %v853_v4 }
 0x476   :  { %v883_v20 = vsel %vm879_vm7, %v831_v57, %v875_v32  ;;  %v864_v35 = vpack.c.bf16 %v1166_v33, %v1166_v33 }
 0x477   :  { %v903_v37 = vunpack.c.l.b16 %v883_v20  ;;  %1167 = vpow2.f32 %v860_v34 }
 0x478   :  { %v868_v38 = vunpack.c.l.bf16 %v864_v35 }
 0x479   :  { %v906_v29 = vpack.c.b16 %v903_v37, %v902_v36 }
 0x47a   :  { %v1056_v30 = vadd.f32 -1.0, %v868_v38 }
 0x47b   :  { %1074 = vmatmul.msk.bf16.vlgmr.msrb.gmra.mxu1 %vm932_vm8, %v906_v29 }
 0x47c   :  { %v876_v43 = vpack.c.bf16 %v1056_v30, %v1056_v30 }
 0x47d   :  { %v1168_v40 = vpop.eup %1167 }
 0x47e   :  { %v865_v41 = vpack.c.bf16 %v1168_v40, %v1168_v40  ;;  %v884_v46 = vsel %vm880_vm11, %v832_v3, %v876_v43  ;;  %v966_v3 = vmul.f32 %v963_v52, %v1760_v25 }
 0x47f   :  { %v904_v48 = vunpack.c.l.b16 %v884_v46 }
 0x480   :  { %v869_v44 = vunpack.c.l.bf16 %v865_v41 }
 0x482   :  { %v1057_v45 = vadd.f32 -1.0, %v869_v44 }
 0x484   :  { %v877_v39 = vpack.c.bf16 %v1057_v45, %v1057_v45 }
 0x486   :  { %v885_v47 = vsel %vm881_vm12, %v833_v5, %v877_v39 }
 0x487   :  { %v905_v49 = vunpack.c.l.b16 %v885_v47 }
 0x489   :  { %v907_v50 = vpack.c.b16 %v905_v49, %v904_v48 }
 0x48b   :  { %1075 = vmatmul.msk.bf16.gmra.mxu1 %vm932_vm8, %v907_v50 }
 0x4f8   :  { %v948_v53 = vpop.f32.mrf.mxu1 }
 0x4f9   :  { %v949_v54 = vadd.f32 %v1126_v42, %v948_v53 }
 0x4fb   :  { %v959_v56 = vmul.f32 %v958_v51, %v949_v54 }
 0x4fd   :  { %v968_v57 = vadd.f32 %v964_v55, %v959_v56 }
 0x4ff   :  { %972 = vst.msk [vmem:[#allocation24] sm:$0xff] %vm241_vm0, %v968_v57 }
 0x500   :  { %v950_v58 = vpop.f32.mrf.mxu1 }
 0x501   :  { %v951_v59 = vadd.f32 %v1126_v42, %v950_v58 }
 0x503   :  { %v960_v61 = vmul.f32 %v958_v51, %v951_v59 }
 0x505   :  { %v969_v62 = vadd.f32 %v965_v60, %v960_v61 }
 0x507   :  { %973 = vst.msk [vmem:[#allocation24 + $0x8] sm:$0xff] %vm241_vm0, %v969_v62 }
 0x508   :  { %v953_v63 = vpop.f32.mrf.mxu1 }
 0x509   :  { %v954_v2 = vadd.f32 %v1126_v42, %v953_v63 }
 0x50b   :  { %v961_v6 = vmul.f32 %v958_v51, %v954_v2 }
 0x50d   :  { %v970_v7 = vadd.f32 %v966_v3, %v961_v6 }
 0x50f   :  { %974 = vst.msk [vmem:[#allocation24 + $0x10] sm:$0xff] %vm241_vm0, %v970_v7 }
 0x510   :  { %v955_v10 = vpop.f32.mrf.mxu1 }
 0x511   :  { %v956_v8 = vadd.f32 %v1126_v42, %v955_v10 }
 0x513   :  { %v962_v9 = vmul.f32 %v958_v51, %v956_v8 }
 0x515   :  { %v971_v11 = vadd.f32 %v967_v17, %v962_v9 }
 0x517   :  { %975 = vst.msk [vmem:[#allocation24 + $0x18] sm:$0xff] %vm241_vm0, %v971_v11 }
 0x518   :  { %988 = dma.vmem_to_hbm [thread:$0]  %s981_s2, 512, %s983_s22, [#allocation5], %s1482_s0, %s1482_s0, %s1483_s30  }
 0x519   :  { %1473 = dma.done.wait [#allocation5], 512  }
 0x51a   :  { %1474 = vsyncadd [#allocation5], 4294966784 }
 0x51b   :  { %993 = vsyncpa [#allocation4], 1 }
 0x51c   :  { %994 = vsyncpa [#allocation8], 1 }
 0x51d   :  { %995 = vsyncpa [#allocation11], 1 }
 0x51e   :  { %996 = vsyncpa [#allocation14], 1 }
 0x51f   :  { %997 = vsyncpa [#allocation17], 1 }
 0x520   :  { %998 = vsyncpa [#allocation21], 1 }
 0x521   :  { %999 = vsyncpa [#allocation5], 1 }
 0x522   :  { %1000 = vsyncpa [#allocation6], 1 }
 0x523   :  { %1001 = vsyncpa [#allocation23], 1 }

</bundles_post_ra>
